<compile_context>
chip_gen: v6e
topology: v6e:2x2x1
jax: 0.10.0
libtpu: 0.0.40
codegen_flags: <defaults>
</compile_context>

<pallas_src>
import functools

import jax
import jax.numpy as jnp
import numpy as np
from jax.experimental import pallas as pl
from jax.experimental.pallas import tpu as pltpu

EPS = 1e-5
NEG_SLOPE = 1.0   # nn.LeakyReLU(True) -> negative_slope = True == 1.0 (identity)


def conv_block_kernel(x_ref, w1_ref, w2_ref, valid_ref,     # inputs
                      out_ref,                               # output
                      pady_ref,                              # VMEM scratch
                      *, Cin, Cout, K, Wp, Rp, R, PADL):
    inv_r = 1.0 / R
    valid = valid_ref[...]                 # (1, Rp) 1.0 at interior pixels

    def bn_lrelu(z):
        # Training-mode BatchNorm (gamma=1, beta=0, biased variance) over the R
        # valid pixels only, fused sum / sum-of-squares, stats in f32.
        zv = z * valid
        s = jnp.sum(zv, axis=1, keepdims=True)
        ss = jnp.sum(zv * zv, axis=1, keepdims=True)
        mean = s * inv_r
        var = jnp.maximum(ss * inv_r - mean * mean, 0.0)    # clamp f32 cancellation
        y = (z - mean) * jax.lax.rsqrt(var + EPS)
        return jnp.where(y >= 0, y, NEG_SLOPE * y)          # LeakyReLU

    def conv_taps(read_tap, w_ref, cin):
        # K*K partial matmuls accumulated in f32 -- no im2col slab anywhere.
        z = jnp.zeros((Cout, Rp), jnp.float32)
        for t in range(K * K):
            dh, dw = t // K, t % K
            off = (dh - 1) * Wp + (dw - 1)                   # flattened spatial shift
            z = z + jnp.dot(w_ref[:, t * cin:(t + 1) * cin], read_tap(off),
                            preferred_element_type=jnp.float32)
        return z

    # ---- conv1: taps read directly from the halo-padded bf16 input slab -------
    z1 = conv_taps(lambda off: x_ref[:, PADL + off:PADL + off + Rp], w1_ref, Cin)
    # conv bias cancelled by BN mean; zero the padding ring so conv2 sees the
    # same zero-padding PyTorch applies.
    y1 = bn_lrelu(z1) * valid

    # ---- stage y1 in a lane-halo-padded f32 scratch; conv2 taps = shifted reads
    zeros_halo = jnp.zeros((Cout, PADL), jnp.float32)
    pady_ref[:, 0:PADL] = zeros_halo
    pady_ref[:, PADL + Rp:PADL + Rp + PADL] = zeros_halo
    pady_ref[:, PADL:PADL + Rp] = y1

    z2 = conv_taps(
        lambda off: pady_ref[:, PADL + off:PADL + off + Rp].astype(jnp.bfloat16),
        w2_ref, Cout)
    y2 = bn_lrelu(z2)

    # ---- MaxPool2d(2, 2): max of the 4 window taps (shifted lane reads; right
    #      halo is still zero and only read at don't-care centers).  The stride-2
    #      compaction happens in the XLA wrapper -- no selection matmul. ---------
    pady_ref[:, PADL:PADL + Rp] = y2
    p01 = pady_ref[:, PADL + 1:PADL + 1 + Rp]
    p10 = pady_ref[:, PADL + Wp:PADL + Wp + Rp]
    p11 = pady_ref[:, PADL + Wp + 1:PADL + Wp + 1 + Rp]
    out_ref[...] = jnp.maximum(jnp.maximum(y2, p01), jnp.maximum(p10, p11))


def conv_block_forward(x_nchw, params):
    """x_nchw: (N, Cin, H, W); returns (N, Cout, H//2, W//2)."""
    w1, b1, w2, b2 = params   # b1/b2 unused: exactly cancelled by training-mode BN
    del b1, b2
    N, Cin, H, W = x_nchw.shape
    Cout, K = w1.shape[0], w1.shape[2]
    assert H % 2 == 0 and W % 2 == 0, "demo assumes even spatial dims"
    Ho, Wo = H // 2, W // 2
    Hp, Wp = H + 2, W + 2
    Rp = N * Hp * Wp          # row-padded spatial extent (lane axis)
    R = N * H * W             # valid pixel count (BN divisor)
    PADL = ((Wp + 1 + 127) // 128) * 128   # lane halo >= max tap shift, 128-aligned
    assert Wp + 1 <= PADL

    # ---- XLA-side glue (pure layout, no 9x expansion): NCHW -> channel-major
    #      row-padded slab (Cin, Rp), plus a PADL lane halo of zeros, in bf16. ----
    xp = jnp.pad(x_nchw.astype(jnp.float32), ((0, 0), (0, 0), (1, 1), (1, 1)))
    x_cr = xp.transpose(1, 0, 2, 3).reshape(Cin, Rp)
    x_cr = jnp.pad(x_cr, ((0, 0), (PADL, PADL))).astype(jnp.bfloat16)

    # Weights as (Cout, K*K*C) with column layout (dh*K + dw)*C + c, in bf16.
    w1m = jnp.transpose(w1, (0, 2, 3, 1)).reshape(Cout, K * K * Cin).astype(jnp.bfloat16)
    w2m = jnp.transpose(w2, (0, 2, 3, 1)).reshape(Cout, K * K * Cout).astype(jnp.bfloat16)

    # (1, Rp) interior-pixel validity row (excludes the zero ring) for BN stats.
    r = np.arange(Rp)
    hp_i, wp_i = (r // Wp) % Hp, r % Wp
    valid = (((hp_i >= 1) & (hp_i <= H) & (wp_i >= 1) & (wp_i <= W))
             .astype(np.float32).reshape(1, Rp))

    kern = functools.partial(conv_block_kernel, Cin=Cin, Cout=Cout, K=K,
                             Wp=Wp, Rp=Rp, R=R, PADL=PADL)
    out_cr = pl.pallas_call(
        kern,
        out_shape=jax.ShapeDtypeStruct((Cout, Rp), jnp.float32),
        grid=(1,),
        in_specs=[
            pl.BlockSpec((Cin, PADL + Rp + PADL), lambda i: (0, 0)),
            pl.BlockSpec((Cout, K * K * Cin), lambda i: (0, 0)),
            pl.BlockSpec((Cout, K * K * Cout), lambda i: (0, 0)),
            pl.BlockSpec((1, Rp), lambda i: (0, 0)),
        ],
        out_specs=pl.BlockSpec((Cout, Rp), lambda i: (0, 0)),
        scratch_shapes=[
            pltpu.VMEM((Cout, PADL + Rp + PADL), jnp.float32),  # halo-padded y1/y2
        ],
        compiler_params=pltpu.CompilerParams(
            dimension_semantics=("arbitrary",),
            # NOTE: raise toward ~100 MiB for large R on v5e/v6e (128 MiB physical),
            # keep <= ~48-56 MiB on v7x (64 MiB physical); demo usage is tiny.
            vmem_limit_bytes=32 * 1024 * 1024),
    )(x_cr, w1m, w2m, jnp.asarray(valid))

    # Stride-2 compaction of the full max slab: pool centers sit at the odd
    # padded coordinates.  Cheap strided slice, no O(R*Ro) matmul.
    out = out_cr.reshape(Cout, N, Hp, Wp)[:, :, 1:H + 1:2, 1:W + 1:2]
    return out.transpose(1, 0, 2, 3)                     # back to NCHW


def conv_block_reference(x_nchw, params):
    """Pure-JAX reference mirroring the PyTorch forward (NCHW, incl. bias/LReLU)."""
    w1, b1, w2, b2 = params

    def conv(x, w, b):
        y = jax.lax.conv_general_dilated(
            x, w, window_strides=(1, 1), padding=((1, 1), (1, 1)),
            dimension_numbers=("NCHW", "OIHW", "NCHW"),
            precision=jax.lax.Precision.HIGHEST)
        return y + b.reshape(1, -1, 1, 1)

    def bn(x):
        mean = jnp.mean(x, axis=(0, 2, 3), keepdims=True)
        var = jnp.mean(jnp.square(x - mean), axis=(0, 2, 3), keepdims=True)
        return (x - mean) * jax.lax.rsqrt(var + EPS)

    def lrelu(x):
        return jnp.where(x >= 0, x, NEG_SLOPE * x)

    y = lrelu(bn(conv(x_nchw, w1, b1)))
    y = lrelu(bn(conv(y, w2, b2)))
    N, C, H, W = y.shape
    return y.reshape(N, C, H // 2, 2, W // 2, 2).max(axis=(3, 5))


if __name__ == "__main__":
    N, Cin, Cout, H, W, K = 2, 4, 8, 16, 16, 3
    key = jax.random.PRNGKey(0)
    k1, k2, k3, k4, k5 = jax.random.split(key, 5)

    x = jax.random.normal(k1, (N, Cin, H, W), jnp.float32)

    # xavier_normal_ for conv weights; PyTorch default uniform for conv biases.
    std1 = (2.0 / (Cin * K * K + Cout * K * K)) ** 0.5
    w1 = std1 * jax.random.normal(k2, (Cout, Cin, K, K), jnp.float32)
    std2 = (2.0 / (Cout * K * K + Cout * K * K)) ** 0.5
    w2 = std2 * jax.random.normal(k3, (Cout, Cout, K, K), jnp.float32)
    bnd1 = 1.0 / (Cin * K * K) ** 0.5
    b1 = jax.random.uniform(k4, (Cout,), jnp.float32, -bnd1, bnd1)
    bnd2 = 1.0 / (Cout * K * K) ** 0.5
    b2 = jax.random.uniform(k5, (Cout,), jnp.float32, -bnd2, bnd2)
    params = (w1, b1, w2, b2)

    out = jax.block_until_ready(conv_block_forward(x, params))
    ref = conv_block_reference(x, params)

    assert out.shape == (N, Cout, H // 2, W // 2), out.shape
    np.testing.assert_allclose(np.asarray(out), np.asarray(ref),
                               atol=5e-2, rtol=5e-2)
    print("KERNEL_OK")
</pallas_src>

<mosaic_0001>
module attributes {stable_mosaic.version = 11 : i64} {
  func.func @conv_block_kernel(%arg0: i32, %arg1: memref<4x904xbf16, #tpu.memory_space<vmem>>, %arg2: memref<8x36xbf16, #tpu.memory_space<vmem>>, %arg3: memref<8x72xbf16, #tpu.memory_space<vmem>>, %arg4: memref<1x648xf32, #tpu.memory_space<vmem>>, %arg5: memref<8x648xf32, #tpu.memory_space<vmem>>, %arg6: memref<8x904xf32, #tpu.memory_space<vmem>>) attributes {dimension_semantics = [#tpu.dimension_semantics<arbitrary>], iteration_bounds = array<i64: 1>, scalar_prefetch = 0 : i64, scratch_operands = 1 : i64, tpu.core_type = #tpu.core_type<tc>, window_params = [{pipeline_mode = #tpu.pipeline_mode<synchronous>, transform_indices = @transform_0, window_bounds = array<i64: 4, 904>}, {pipeline_mode = #tpu.pipeline_mode<synchronous>, transform_indices = @transform_1, window_bounds = array<i64: 8, 36>}, {pipeline_mode = #tpu.pipeline_mode<synchronous>, transform_indices = @transform_2, window_bounds = array<i64: 8, 72>}, {pipeline_mode = #tpu.pipeline_mode<synchronous>, transform_indices = @transform_3, window_bounds = array<i64: 1, 648>}, {pipeline_mode = #tpu.pipeline_mode<synchronous>, transform_indices = @transform_4, window_bounds = array<i64: 8, 648>}]} {
    %c0 = arith.constant 0 : index
    %c0_0 = arith.constant 0 : index
    %0 = vector.load %arg4[%c0, %c0_0] : memref<1x648xf32, #tpu.memory_space<vmem>>, vector<1x648xf32>
    %cst = arith.constant 0.000000e+00 : f32
    %1 = vector.broadcast %cst : f32 to vector<8x648xf32>
    %c0_1 = arith.constant 0 : index
    %c0_2 = arith.constant 0 : index
    %2 = vector.load %arg2[%c0_1, %c0_2] : memref<8x36xbf16, #tpu.memory_space<vmem>>, vector<8x4xbf16>
    %c0_3 = arith.constant 0 : index
    %c109 = arith.constant 109 : index
    %3 = vector.load %arg1[%c0_3, %c109] : memref<4x904xbf16, #tpu.memory_space<vmem>>, vector<4x648xbf16>
    %cst_4 = arith.constant dense<0.000000e+00> : vector<8x648xf32>
    %4 = tpu.matmul %2, %3, %cst_4 {dimension_numbers = #tpu.dot_dimension_numbers<[1], [0], [0], [1], [0, 0, 1, 1], [], []>} : vector<8x4xbf16>, vector<4x648xbf16>, vector<8x648xf32> -> vector<8x648xf32>
    %5 = arith.addf %1, %4 : vector<8x648xf32>
    %c0_5 = arith.constant 0 : index
    %c4 = arith.constant 4 : index
    %6 = vector.load %arg2[%c0_5, %c4] : memref<8x36xbf16, #tpu.memory_space<vmem>>, vector<8x4xbf16>
    %c0_6 = arith.constant 0 : index
    %c110 = arith.constant 110 : index
    %7 = vector.load %arg1[%c0_6, %c110] : memref<4x904xbf16, #tpu.memory_space<vmem>>, vector<4x648xbf16>
    %cst_7 = arith.constant dense<0.000000e+00> : vector<8x648xf32>
    %8 = tpu.matmul %6, %7, %cst_7 {dimension_numbers = #tpu.dot_dimension_numbers<[1], [0], [0], [1], [0, 0, 1, 1], [], []>} : vector<8x4xbf16>, vector<4x648xbf16>, vector<8x648xf32> -> vector<8x648xf32>
    %9 = arith.addf %5, %8 : vector<8x648xf32>
    %c0_8 = arith.constant 0 : index
    %c8 = arith.constant 8 : index
    %10 = vector.load %arg2[%c0_8, %c8] : memref<8x36xbf16, #tpu.memory_space<vmem>>, vector<8x4xbf16>
    %c0_9 = arith.constant 0 : index
    %c111 = arith.constant 111 : index
    %11 = vector.load %arg1[%c0_9, %c111] : memref<4x904xbf16, #tpu.memory_space<vmem>>, vector<4x648xbf16>
    %cst_10 = arith.constant dense<0.000000e+00> : vector<8x648xf32>
    %12 = tpu.matmul %10, %11, %cst_10 {dimension_numbers = #tpu.dot_dimension_numbers<[1], [0], [0], [1], [0, 0, 1, 1], [], []>} : vector<8x4xbf16>, vector<4x648xbf16>, vector<8x648xf32> -> vector<8x648xf32>
    %13 = arith.addf %9, %12 : vector<8x648xf32>
    %c0_11 = arith.constant 0 : index
    %c12 = arith.constant 12 : index
    %14 = vector.load %arg2[%c0_11, %c12] : memref<8x36xbf16, #tpu.memory_space<vmem>>, vector<8x4xbf16>
    %c0_12 = arith.constant 0 : index
    %c127 = arith.constant 127 : index
    %15 = vector.load %arg1[%c0_12, %c127] : memref<4x904xbf16, #tpu.memory_space<vmem>>, vector<4x648xbf16>
    %cst_13 = arith.constant dense<0.000000e+00> : vector<8x648xf32>
    %16 = tpu.matmul %14, %15, %cst_13 {dimension_numbers = #tpu.dot_dimension_numbers<[1], [0], [0], [1], [0, 0, 1, 1], [], []>} : vector<8x4xbf16>, vector<4x648xbf16>, vector<8x648xf32> -> vector<8x648xf32>
    %17 = arith.addf %13, %16 : vector<8x648xf32>
    %c0_14 = arith.constant 0 : index
    %c16 = arith.constant 16 : index
    %18 = vector.load %arg2[%c0_14, %c16] : memref<8x36xbf16, #tpu.memory_space<vmem>>, vector<8x4xbf16>
    %c0_15 = arith.constant 0 : index
    %c128 = arith.constant 128 : index
    %19 = vector.load %arg1[%c0_15, %c128] : memref<4x904xbf16, #tpu.memory_space<vmem>>, vector<4x648xbf16>
    %cst_16 = arith.constant dense<0.000000e+00> : vector<8x648xf32>
    %20 = tpu.matmul %18, %19, %cst_16 {dimension_numbers = #tpu.dot_dimension_numbers<[1], [0], [0], [1], [0, 0, 1, 1], [], []>} : vector<8x4xbf16>, vector<4x648xbf16>, vector<8x648xf32> -> vector<8x648xf32>
    %21 = arith.addf %17, %20 : vector<8x648xf32>
    %c0_17 = arith.constant 0 : index
    %c20 = arith.constant 20 : index
    %22 = vector.load %arg2[%c0_17, %c20] : memref<8x36xbf16, #tpu.memory_space<vmem>>, vector<8x4xbf16>
    %c0_18 = arith.constant 0 : index
    %c129 = arith.constant 129 : index
    %23 = vector.load %arg1[%c0_18, %c129] : memref<4x904xbf16, #tpu.memory_space<vmem>>, vector<4x648xbf16>
    %cst_19 = arith.constant dense<0.000000e+00> : vector<8x648xf32>
    %24 = tpu.matmul %22, %23, %cst_19 {dimension_numbers = #tpu.dot_dimension_numbers<[1], [0], [0], [1], [0, 0, 1, 1], [], []>} : vector<8x4xbf16>, vector<4x648xbf16>, vector<8x648xf32> -> vector<8x648xf32>
    %25 = arith.addf %21, %24 : vector<8x648xf32>
    %c0_20 = arith.constant 0 : index
    %c24 = arith.constant 24 : index
    %26 = vector.load %arg2[%c0_20, %c24] : memref<8x36xbf16, #tpu.memory_space<vmem>>, vector<8x4xbf16>
    %c0_21 = arith.constant 0 : index
    %c145 = arith.constant 145 : index
    %27 = vector.load %arg1[%c0_21, %c145] : memref<4x904xbf16, #tpu.memory_space<vmem>>, vector<4x648xbf16>
    %cst_22 = arith.constant dense<0.000000e+00> : vector<8x648xf32>
    %28 = tpu.matmul %26, %27, %cst_22 {dimension_numbers = #tpu.dot_dimension_numbers<[1], [0], [0], [1], [0, 0, 1, 1], [], []>} : vector<8x4xbf16>, vector<4x648xbf16>, vector<8x648xf32> -> vector<8x648xf32>
    %29 = arith.addf %25, %28 : vector<8x648xf32>
    %c0_23 = arith.constant 0 : index
    %c28 = arith.constant 28 : index
    %30 = vector.load %arg2[%c0_23, %c28] : memref<8x36xbf16, #tpu.memory_space<vmem>>, vector<8x4xbf16>
    %c0_24 = arith.constant 0 : index
    %c146 = arith.constant 146 : index
    %31 = vector.load %arg1[%c0_24, %c146] : memref<4x904xbf16, #tpu.memory_space<vmem>>, vector<4x648xbf16>
    %cst_25 = arith.constant dense<0.000000e+00> : vector<8x648xf32>
    %32 = tpu.matmul %30, %31, %cst_25 {dimension_numbers = #tpu.dot_dimension_numbers<[1], [0], [0], [1], [0, 0, 1, 1], [], []>} : vector<8x4xbf16>, vector<4x648xbf16>, vector<8x648xf32> -> vector<8x648xf32>
    %33 = arith.addf %29, %32 : vector<8x648xf32>
    %c0_26 = arith.constant 0 : index
    %c32 = arith.constant 32 : index
    %34 = vector.load %arg2[%c0_26, %c32] : memref<8x36xbf16, #tpu.memory_space<vmem>>, vector<8x4xbf16>
    %c0_27 = arith.constant 0 : index
    %c147 = arith.constant 147 : index
    %35 = vector.load %arg1[%c0_27, %c147] : memref<4x904xbf16, #tpu.memory_space<vmem>>, vector<4x648xbf16>
    %cst_28 = arith.constant dense<0.000000e+00> : vector<8x648xf32>
    %36 = tpu.matmul %34, %35, %cst_28 {dimension_numbers = #tpu.dot_dimension_numbers<[1], [0], [0], [1], [0, 0, 1, 1], [], []>} : vector<8x4xbf16>, vector<4x648xbf16>, vector<8x648xf32> -> vector<8x648xf32>
    %37 = arith.addf %33, %36 : vector<8x648xf32>
    %38 = vector.broadcast %0 : vector<1x648xf32> to vector<8x648xf32>
    %39 = arith.mulf %37, %38 : vector<8x648xf32>
    %cst_29 = arith.constant dense<0.000000e+00> : vector<8xf32>
    %40 = vector.multi_reduction <add>, %39, %cst_29 [1] : vector<8x648xf32> to vector<8xf32>
    %41 = vector.shape_cast %40 : vector<8xf32> to vector<8x1xf32>
    %42 = arith.mulf %39, %39 : vector<8x648xf32>
    %cst_30 = arith.constant dense<0.000000e+00> : vector<8xf32>
    %43 = vector.multi_reduction <add>, %42, %cst_30 [1] : vector<8x648xf32> to vector<8xf32>
    %44 = vector.shape_cast %43 : vector<8xf32> to vector<8x1xf32>
    %cst_31 = arith.constant 0.001953125 : f32
    %45 = vector.broadcast %cst_31 : f32 to vector<8x1xf32>
    %46 = arith.mulf %41, %45 : vector<8x1xf32>
    %cst_32 = arith.constant 0.001953125 : f32
    %47 = vector.broadcast %cst_32 : f32 to vector<8x1xf32>
    %48 = arith.mulf %44, %47 : vector<8x1xf32>
    %49 = arith.mulf %46, %46 : vector<8x1xf32>
    %50 = arith.subf %48, %49 : vector<8x1xf32>
    %cst_33 = arith.constant 0.000000e+00 : f32
    %51 = vector.broadcast %cst_33 : f32 to vector<8x1xf32>
    %52 = arith.maximumf %50, %51 : vector<8x1xf32>
    %53 = vector.broadcast %46 : vector<8x1xf32> to vector<8x648xf32>
    %54 = arith.subf %37, %53 : vector<8x648xf32>
    %cst_34 = arith.constant 9.99999974E-6 : f32
    %55 = vector.broadcast %cst_34 : f32 to vector<8x1xf32>
    %56 = arith.addf %52, %55 : vector<8x1xf32>
    %57 = math.rsqrt %56 : vector<8x1xf32>
    %58 = vector.broadcast %57 : vector<8x1xf32> to vector<8x648xf32>
    %59 = arith.mulf %54, %58 : vector<8x648xf32>
    %cst_35 = arith.constant 0.000000e+00 : f32
    %60 = vector.broadcast %cst_35 : f32 to vector<8x648xf32>
    %61 = arith.cmpf oge, %59, %60 : vector<8x648xf32>
    %cst_36 = arith.constant 1.000000e+00 : f32
    %62 = vector.broadcast %cst_36 : f32 to vector<8x648xf32>
    %63 = arith.mulf %62, %59 : vector<8x648xf32>
    %64 = arith.select %61, %59, %63 : vector<8x648xi1>, vector<8x648xf32>
    %65 = vector.broadcast %0 : vector<1x648xf32> to vector<8x648xf32>
    %66 = arith.mulf %64, %65 : vector<8x648xf32>
    %cst_37 = arith.constant 0.000000e+00 : f32
    %67 = vector.broadcast %cst_37 : f32 to vector<8x128xf32>
    %c0_38 = arith.constant 0 : index
    %c0_39 = arith.constant 0 : index
    %68 = vector.load %arg6[%c0_38, %c0_39] : memref<8x904xf32, #tpu.memory_space<vmem>>, vector<8x128xf32>
    tpu.vector_store %arg6[%c0_38, %c0_39], %67 {strides = array<i32>} : memref<8x904xf32, #tpu.memory_space<vmem>>, vector<8x128xf32>,
    %c0_40 = arith.constant 0 : index
    %c776 = arith.constant 776 : index
    %69 = vector.load %arg6[%c0_40, %c776] : memref<8x904xf32, #tpu.memory_space<vmem>>, vector<8x128xf32>
    tpu.vector_store %arg6[%c0_40, %c776], %67 {strides = array<i32>} : memref<8x904xf32, #tpu.memory_space<vmem>>, vector<8x128xf32>,
    %c0_41 = arith.constant 0 : index
    %c128_42 = arith.constant 128 : index
    %70 = vector.load %arg6[%c0_41, %c128_42] : memref<8x904xf32, #tpu.memory_space<vmem>>, vector<8x648xf32>
    tpu.vector_store %arg6[%c0_41, %c128_42], %66 {strides = array<i32>} : memref<8x904xf32, #tpu.memory_space<vmem>>, vector<8x648xf32>,
    %cst_43 = arith.constant 0.000000e+00 : f32
    %71 = vector.broadcast %cst_43 : f32 to vector<8x648xf32>
    %c0_44 = arith.constant 0 : index
    %c0_45 = arith.constant 0 : index
    %72 = vector.load %arg3[%c0_44, %c0_45] : memref<8x72xbf16, #tpu.memory_space<vmem>>, vector<8x8xbf16>
    %c0_46 = arith.constant 0 : index
    %c109_47 = arith.constant 109 : index
    %73 = vector.load %arg6[%c0_46, %c109_47] : memref<8x904xf32, #tpu.memory_space<vmem>>, vector<8x648xf32>
    %74 = arith.truncf %73 : vector<8x648xf32> to vector<8x648xbf16>
    %cst_48 = arith.constant dense<0.000000e+00> : vector<8x648xf32>
    %75 = tpu.matmul %72, %74, %cst_48 {dimension_numbers = #tpu.dot_dimension_numbers<[1], [0], [0], [1], [0, 0, 1, 1], [], []>} : vector<8x8xbf16>, vector<8x648xbf16>, vector<8x648xf32> -> vector<8x648xf32>
    %76 = arith.addf %71, %75 : vector<8x648xf32>
    %c0_49 = arith.constant 0 : index
    %c8_50 = arith.constant 8 : index
    %77 = vector.load %arg3[%c0_49, %c8_50] : memref<8x72xbf16, #tpu.memory_space<vmem>>, vector<8x8xbf16>
    %c0_51 = arith.constant 0 : index
    %c110_52 = arith.constant 110 : index
    %78 = vector.load %arg6[%c0_51, %c110_52] : memref<8x904xf32, #tpu.memory_space<vmem>>, vector<8x648xf32>
    %79 = arith.truncf %78 : vector<8x648xf32> to vector<8x648xbf16>
    %cst_53 = arith.constant dense<0.000000e+00> : vector<8x648xf32>
    %80 = tpu.matmul %77, %79, %cst_53 {dimension_numbers = #tpu.dot_dimension_numbers<[1], [0], [0], [1], [0, 0, 1, 1], [], []>} : vector<8x8xbf16>, vector<8x648xbf16>, vector<8x648xf32> -> vector<8x648xf32>
    %81 = arith.addf %76, %80 : vector<8x648xf32>
    %c0_54 = arith.constant 0 : index
    %c16_55 = arith.constant 16 : index
    %82 = vector.load %arg3[%c0_54, %c16_55] : memref<8x72xbf16, #tpu.memory_space<vmem>>, vector<8x8xbf16>
    %c0_56 = arith.constant 0 : index
    %c111_57 = arith.constant 111 : index
    %83 = vector.load %arg6[%c0_56, %c111_57] : memref<8x904xf32, #tpu.memory_space<vmem>>, vector<8x648xf32>
    %84 = arith.truncf %83 : vector<8x648xf32> to vector<8x648xbf16>
    %cst_58 = arith.constant dense<0.000000e+00> : vector<8x648xf32>
    %85 = tpu.matmul %82, %84, %cst_58 {dimension_numbers = #tpu.dot_dimension_numbers<[1], [0], [0], [1], [0, 0, 1, 1], [], []>} : vector<8x8xbf16>, vector<8x648xbf16>, vector<8x648xf32> -> vector<8x648xf32>
    %86 = arith.addf %81, %85 : vector<8x648xf32>
    %c0_59 = arith.constant 0 : index
    %c24_60 = arith.constant 24 : index
    %87 = vector.load %arg3[%c0_59, %c24_60] : memref<8x72xbf16, #tpu.memory_space<vmem>>, vector<8x8xbf16>
    %c0_61 = arith.constant 0 : index
    %c127_62 = arith.constant 127 : index
    %88 = vector.load %arg6[%c0_61, %c127_62] : memref<8x904xf32, #tpu.memory_space<vmem>>, vector<8x648xf32>
    %89 = arith.truncf %88 : vector<8x648xf32> to vector<8x648xbf16>
    %cst_63 = arith.constant dense<0.000000e+00> : vector<8x648xf32>
    %90 = tpu.matmul %87, %89, %cst_63 {dimension_numbers = #tpu.dot_dimension_numbers<[1], [0], [0], [1], [0, 0, 1, 1], [], []>} : vector<8x8xbf16>, vector<8x648xbf16>, vector<8x648xf32> -> vector<8x648xf32>
    %91 = arith.addf %86, %90 : vector<8x648xf32>
    %c0_64 = arith.constant 0 : index
    %c32_65 = arith.constant 32 : index
    %92 = vector.load %arg3[%c0_64, %c32_65] : memref<8x72xbf16, #tpu.memory_space<vmem>>, vector<8x8xbf16>
    %c0_66 = arith.constant 0 : index
    %c128_67 = arith.constant 128 : index
    %93 = vector.load %arg6[%c0_66, %c128_67] : memref<8x904xf32, #tpu.memory_space<vmem>>, vector<8x648xf32>
    %94 = arith.truncf %93 : vector<8x648xf32> to vector<8x648xbf16>
    %cst_68 = arith.constant dense<0.000000e+00> : vector<8x648xf32>
    %95 = tpu.matmul %92, %94, %cst_68 {dimension_numbers = #tpu.dot_dimension_numbers<[1], [0], [0], [1], [0, 0, 1, 1], [], []>} : vector<8x8xbf16>, vector<8x648xbf16>, vector<8x648xf32> -> vector<8x648xf32>
    %96 = arith.addf %91, %95 : vector<8x648xf32>
    %c0_69 = arith.constant 0 : index
    %c40 = arith.constant 40 : index
    %97 = vector.load %arg3[%c0_69, %c40] : memref<8x72xbf16, #tpu.memory_space<vmem>>, vector<8x8xbf16>
    %c0_70 = arith.constant 0 : index
    %c129_71 = arith.constant 129 : index
    %98 = vector.load %arg6[%c0_70, %c129_71] : memref<8x904xf32, #tpu.memory_space<vmem>>, vector<8x648xf32>
    %99 = arith.truncf %98 : vector<8x648xf32> to vector<8x648xbf16>
    %cst_72 = arith.constant dense<0.000000e+00> : vector<8x648xf32>
    %100 = tpu.matmul %97, %99, %cst_72 {dimension_numbers = #tpu.dot_dimension_numbers<[1], [0], [0], [1], [0, 0, 1, 1], [], []>} : vector<8x8xbf16>, vector<8x648xbf16>, vector<8x648xf32> -> vector<8x648xf32>
    %101 = arith.addf %96, %100 : vector<8x648xf32>
    %c0_73 = arith.constant 0 : index
    %c48 = arith.constant 48 : index
    %102 = vector.load %arg3[%c0_73, %c48] : memref<8x72xbf16, #tpu.memory_space<vmem>>, vector<8x8xbf16>
    %c0_74 = arith.constant 0 : index
    %c145_75 = arith.constant 145 : index
    %103 = vector.load %arg6[%c0_74, %c145_75] : memref<8x904xf32, #tpu.memory_space<vmem>>, vector<8x648xf32>
    %104 = arith.truncf %103 : vector<8x648xf32> to vector<8x648xbf16>
    %cst_76 = arith.constant dense<0.000000e+00> : vector<8x648xf32>
    %105 = tpu.matmul %102, %104, %cst_76 {dimension_numbers = #tpu.dot_dimension_numbers<[1], [0], [0], [1], [0, 0, 1, 1], [], []>} : vector<8x8xbf16>, vector<8x648xbf16>, vector<8x648xf32> -> vector<8x648xf32>
    %106 = arith.addf %101, %105 : vector<8x648xf32>
    %c0_77 = arith.constant 0 : index
    %c56 = arith.constant 56 : index
    %107 = vector.load %arg3[%c0_77, %c56] : memref<8x72xbf16, #tpu.memory_space<vmem>>, vector<8x8xbf16>
    %c0_78 = arith.constant 0 : index
    %c146_79 = arith.constant 146 : index
    %108 = vector.load %arg6[%c0_78, %c146_79] : memref<8x904xf32, #tpu.memory_space<vmem>>, vector<8x648xf32>
    %109 = arith.truncf %108 : vector<8x648xf32> to vector<8x648xbf16>
    %cst_80 = arith.constant dense<0.000000e+00> : vector<8x648xf32>
    %110 = tpu.matmul %107, %109, %cst_80 {dimension_numbers = #tpu.dot_dimension_numbers<[1], [0], [0], [1], [0, 0, 1, 1], [], []>} : vector<8x8xbf16>, vector<8x648xbf16>, vector<8x648xf32> -> vector<8x648xf32>
    %111 = arith.addf %106, %110 : vector<8x648xf32>
    %c0_81 = arith.constant 0 : index
    %c64 = arith.constant 64 : index
    %112 = vector.load %arg3[%c0_81, %c64] : memref<8x72xbf16, #tpu.memory_space<vmem>>, vector<8x8xbf16>
    %c0_82 = arith.constant 0 : index
    %c147_83 = arith.constant 147 : index
    %113 = vector.load %arg6[%c0_82, %c147_83] : memref<8x904xf32, #tpu.memory_space<vmem>>, vector<8x648xf32>
    %114 = arith.truncf %113 : vector<8x648xf32> to vector<8x648xbf16>
    %cst_84 = arith.constant dense<0.000000e+00> : vector<8x648xf32>
    %115 = tpu.matmul %112, %114, %cst_84 {dimension_numbers = #tpu.dot_dimension_numbers<[1], [0], [0], [1], [0, 0, 1, 1], [], []>} : vector<8x8xbf16>, vector<8x648xbf16>, vector<8x648xf32> -> vector<8x648xf32>
    %116 = arith.addf %111, %115 : vector<8x648xf32>
    %117 = vector.broadcast %0 : vector<1x648xf32> to vector<8x648xf32>
    %118 = arith.mulf %116, %117 : vector<8x648xf32>
    %cst_85 = arith.constant dense<0.000000e+00> : vector<8xf32>
    %119 = vector.multi_reduction <add>, %118, %cst_85 [1] : vector<8x648xf32> to vector<8xf32>
    %120 = vector.shape_cast %119 : vector<8xf32> to vector<8x1xf32>
    %121 = arith.mulf %118, %118 : vector<8x648xf32>
    %cst_86 = arith.constant dense<0.000000e+00> : vector<8xf32>
    %122 = vector.multi_reduction <add>, %121, %cst_86 [1] : vector<8x648xf32> to vector<8xf32>
    %123 = vector.shape_cast %122 : vector<8xf32> to vector<8x1xf32>
    %cst_87 = arith.constant 0.001953125 : f32
    %124 = vector.broadcast %cst_87 : f32 to vector<8x1xf32>
    %125 = arith.mulf %120, %124 : vector<8x1xf32>
    %cst_88 = arith.constant 0.001953125 : f32
    %126 = vector.broadcast %cst_88 : f32 to vector<8x1xf32>
    %127 = arith.mulf %123, %126 : vector<8x1xf32>
    %128 = arith.mulf %125, %125 : vector<8x1xf32>
    %129 = arith.subf %127, %128 : vector<8x1xf32>
    %cst_89 = arith.constant 0.000000e+00 : f32
    %130 = vector.broadcast %cst_89 : f32 to vector<8x1xf32>
    %131 = arith.maximumf %129, %130 : vector<8x1xf32>
    %132 = vector.broadcast %125 : vector<8x1xf32> to vector<8x648xf32>
    %133 = arith.subf %116, %132 : vector<8x648xf32>
    %cst_90 = arith.constant 9.99999974E-6 : f32
    %134 = vector.broadcast %cst_90 : f32 to vector<8x1xf32>
    %135 = arith.addf %131, %134 : vector<8x1xf32>
    %136 = math.rsqrt %135 : vector<8x1xf32>
    %137 = vector.broadcast %136 : vector<8x1xf32> to vector<8x648xf32>
    %138 = arith.mulf %133, %137 : vector<8x648xf32>
    %cst_91 = arith.constant 0.000000e+00 : f32
    %139 = vector.broadcast %cst_91 : f32 to vector<8x648xf32>
    %140 = arith.cmpf oge, %138, %139 : vector<8x648xf32>
    %cst_92 = arith.constant 1.000000e+00 : f32
    %141 = vector.broadcast %cst_92 : f32 to vector<8x648xf32>
    %142 = arith.mulf %141, %138 : vector<8x648xf32>
    %143 = arith.select %140, %138, %142 : vector<8x648xi1>, vector<8x648xf32>
    %c0_93 = arith.constant 0 : index
    %c128_94 = arith.constant 128 : index
    %144 = vector.load %arg6[%c0_93, %c128_94] : memref<8x904xf32, #tpu.memory_space<vmem>>, vector<8x648xf32>
    tpu.vector_store %arg6[%c0_93, %c128_94], %143 {strides = array<i32>} : memref<8x904xf32, #tpu.memory_space<vmem>>, vector<8x648xf32>,
    %c0_95 = arith.constant 0 : index
    %c129_96 = arith.constant 129 : index
    %145 = vector.load %arg6[%c0_95, %c129_96] : memref<8x904xf32, #tpu.memory_space<vmem>>, vector<8x648xf32>
    %c0_97 = arith.constant 0 : index
    %c146_98 = arith.constant 146 : index
    %146 = vector.load %arg6[%c0_97, %c146_98] : memref<8x904xf32, #tpu.memory_space<vmem>>, vector<8x648xf32>
    %c0_99 = arith.constant 0 : index
    %c147_100 = arith.constant 147 : index
    %147 = vector.load %arg6[%c0_99, %c147_100] : memref<8x904xf32, #tpu.memory_space<vmem>>, vector<8x648xf32>
    %148 = arith.maximumf %143, %145 : vector<8x648xf32>
    %149 = arith.maximumf %146, %147 : vector<8x648xf32>
    %150 = arith.maximumf %148, %149 : vector<8x648xf32>
    %c0_101 = arith.constant 0 : index
    %c0_102 = arith.constant 0 : index
    %151 = vector.load %arg5[%c0_101, %c0_102] : memref<8x648xf32, #tpu.memory_space<vmem>>, vector<8x648xf32>
    tpu.vector_store %arg5[%c0_101, %c0_102], %150 {strides = array<i32>} : memref<8x648xf32, #tpu.memory_space<vmem>>, vector<8x648xf32>,
    return
  }
  func.func @transform_0(%arg0: i32) -> (i32, i32) {
    %c0_i32 = arith.constant 0 : i32
    %c0_i32_0 = arith.constant 0 : i32
    %c0_i32_1 = arith.constant 0 : i32
    return %c0_i32, %c0_i32_0 : i32, i32
  }
  func.func @transform_1(%arg0: i32) -> (i32, i32) {
    %c0_i32 = arith.constant 0 : i32
    %c0_i32_0 = arith.constant 0 : i32
    %c0_i32_1 = arith.constant 0 : i32
    return %c0_i32, %c0_i32_0 : i32, i32
  }
  func.func @transform_2(%arg0: i32) -> (i32, i32) {
    %c0_i32 = arith.constant 0 : i32
    %c0_i32_0 = arith.constant 0 : i32
    %c0_i32_1 = arith.constant 0 : i32
    return %c0_i32, %c0_i32_0 : i32, i32
  }
  func.func @transform_3(%arg0: i32) -> (i32, i32) {
    %c0_i32 = arith.constant 0 : i32
    %c0_i32_0 = arith.constant 0 : i32
    %c0_i32_1 = arith.constant 0 : i32
    return %c0_i32, %c0_i32_0 : i32, i32
  }
  func.func @transform_4(%arg0: i32) -> (i32, i32) {
    %c0_i32 = arith.constant 0 : i32
    %c0_i32_0 = arith.constant 0 : i32
    %c0_i32_1 = arith.constant 0 : i32
    return %c0_i32, %c0_i32_0 : i32, i32
  }
}

</mosaic_0001>

<bundles_post_ra>
// kernel: tpu_custom_call.1
= control target key start
LH: loop header
LB: loop body
LE: loop exit
PB: predicated region body
PF: predicated region fallthrough
CT: control target
= control target key end

     0   :  { %9 = vsyncpa [#allocation4], 0  ;;  %s4721_s0 = inlined_call_operand.hbm [shape: bf16[4,904], index: 0, kind: input, shape index: {}]   ;;  %s4722_s1 = inlined_call_operand.hbm [shape: bf16[8,36], index: 1, kind: input, shape index: {}]   ;;  %s4723_s2 = inlined_call_operand.hbm [shape: bf16[8,72], index: 2, kind: input, shape index: {}]   ;;  %s4724_s3 = inlined_call_operand.hbm [shape: f32[1,648], index: 3, kind: input, shape index: {}]   ;;  %s4725_s4 = inlined_call_operand.hbm [shape: f32[8,648], index: 4, kind: output, shape index: {}]  }
   0x1   :  { %10 = vsyncpa [#allocation7], 0 }
   0x2   :  { %11 = vsyncpa [#allocation10], 0 }
   0x3   :  { %12 = vsyncpa [#allocation5], 0  ;;  %s3910_s15 = smov [#allocation6]   ;;  %s3911_s17 = smov [#allocation3]  }
   0x4   :  { %s29_s16 = sshll.u32 %s3910_s15, 4  ;;  %s19_s18 = sshll.u32 %s3911_s17, 4  ;;  %s30_s16 = int_to_ptr.vmem [resolvable:$true] %s29_s16  ;;  %s20_s18 = int_to_ptr.vmem [resolvable:$true] %s19_s18 }
   0x5   :  { %s3810_s19 = scalar_lea.vmem %s30_s16, 64  ;;  %p3815_p1 = scmp.lt.s32.totalorder %s30_s16, %s30_s16 }
   0x6   :  { %p3811_p0 = scmp.ne.s32.totalorder %s30_s16, %s3810_s19  ;;  %p3816_p2 = scmp.lt.s32.totalorder %s3810_s19, %s3810_s19 }
   0x8   :  { %p3817_p3 = por %p3816_p2, %p3815_p1 }
   0xa   :  { %p3818_p4 = pnand %p3817_p3, %p3811_p0 }
   0xc   :  { %3821 = shalt.err (!%p3818_p4)
}
   0xd   :  { %32 = dma.hbm_to_vmem [thread:$0]  %s4722_s1, 64, %s30_s16, [#allocation7]  }
   0xe   :  { %s3830_s22 = scalar_lea.vmem %s20_s18, 256  ;;  %p3835_p6 = scmp.lt.s32.totalorder %s20_s18, %s20_s18 }
   0xf   :  { %p3831_p5 = scmp.ne.s32.totalorder %s20_s18, %s3830_s22  ;;  %p3836_p7 = scmp.lt.s32.totalorder %s3830_s22, %s3830_s22 }
  0x11   :  { %p3837_p8 = por %p3836_p7, %p3835_p6 }
  0x13   :  { %p3838_p9 = pnand %p3837_p8, %p3831_p5 }
  0x15   :  { %3841 = shalt.err (!%p3838_p9)
}
  0x16   :  { %22 = dma.hbm_to_vmem [thread:$0]  %s4721_s0, 256, %s20_s18, [#allocation4]  }
  0x17   :  { %s3912_s25 = smov [#allocation8]   ;;  %s3913_s27 = smov [#allocation9]  }
  0x18   :  { %s39_s26 = sshll.u32 %s3912_s25, 4  ;;  %s49_s28 = sshll.u32 %s3913_s27, 4  ;;  %s40_s26 = int_to_ptr.vmem [resolvable:$true] %s39_s26  ;;  %s50_s28 = int_to_ptr.vmem [resolvable:$true] %s49_s28 }
  0x19   :  { %s3850_s29 = scalar_lea.vmem %s40_s26, 64  ;;  %p3855_p11 = scmp.lt.s32.totalorder %s40_s26, %s40_s26 }
  0x1a   :  { %p3851_p10 = scmp.ne.s32.totalorder %s40_s26, %s3850_s29  ;;  %p3856_p12 = scmp.lt.s32.totalorder %s3850_s29, %s3850_s29 }
  0x1c   :  { %p3857_p13 = por %p3856_p12, %p3855_p11 }
  0x1e   :  { %p3858_p0 = pnand %p3857_p13, %p3851_p10 }
  0x20   :  { %3861 = shalt.err (!%p3858_p0)
}
  0x21   :  { %42 = dma.hbm_to_vmem [thread:$0]  %s4723_s2, 64, %s40_s26, [#allocation7]  }
  0x22   :  { %s3870_s5 = scalar_lea.vmem %s50_s28, 96  ;;  %p3875_p2 = scmp.lt.s32.totalorder %s50_s28, %s50_s28 }
  0x23   :  { %p3871_p1 = scmp.ne.s32.totalorder %s50_s28, %s3870_s5  ;;  %p3876_p3 = scmp.lt.s32.totalorder %s3870_s5, %s3870_s5 }
  0x25   :  { %p3877_p4 = por %p3876_p3, %p3875_p2 }
  0x27   :  { %p3878_p5 = pnand %p3877_p4, %p3871_p1 }
  0x29   :  { %3881 = shalt.err (!%p3878_p5)
}
  0x2a   :  { %52 = dma.hbm_to_vmem [thread:$0]  %s4724_s3, 96, %s50_s28, [#allocation10]  }
  0x2b   :  { %3902 = dma.done.wait [#allocation4], 256  }
  0x2c   :  { %3903 = vsyncadd [#allocation4], 4294967040 }
  0x2d   :  { %3904 = dma.done.wait [#allocation7], 128  }
  0x2e   :  { %3905 = vsyncadd [#allocation7], 4294967168 }
  0x2f   :  { %3906 = dma.done.wait [#allocation10], 96  }
  0x30   :  { %3907 = vsyncadd [#allocation10], 4294967200  ;;  %v81_v0 = vlaneseq  ;;  %v3914_v1 = vmov 1983009808   ;;  %v3915_v6 = vmov 0   ;;  %v68_v7 = vld [vmem:[#allocation3] sm:$0xff] }
  0x31   :  { %v79_v2 = vunpack.c.l.s4 %v3914_v1  ;;  %175 = vmatprep.mubr.bf16.mxu0 %v3915_v6  ;;  %216 = vmatprep.mubr.bf16.mxu1 %v3915_v6  ;;  %v3983_v8 = vld [vmem:[#allocation6] sm:$0xf]  ;;  %v77_v11 = vcombine.high %v68_v7, %v68_v7  ;;  %s3916_s2 = smov 18   ;;  %s3917_s3 = smov 124   ;;  %v633_v18 = vld [vmem:[#allocation3 + $0x8] sm:$0x3f] }
  0x32   :  { %v3976_v3 = vshrl.u32 %v81_v0, 7  ;;  %v3634_v10 = vcombine.low %v3983_v8, %v3983_v8  ;;  %v3635_v14 = vld.sshfl [vmem:[#allocation3 + $0x8] sm:$0x33 pattern:$0x76325410]  ;;  %s3918_s7 = smov 19   ;;  %v658_v21 = vcombine.high %v633_v18, %v633_v18 }
  0x33   :  { %v80_v4 = vunpack.c.0.s8 %v79_v2  ;;  %v101_v15 = vcombine.high %v3635_v14, %v3635_v14  ;;  %s3919_s8 = smov 17   ;;  %v3788_v17 = vld [vmem:[#allocation6] ss:$0 sps:$4 sm:$0xff]   ;;  %s3920_s9 = smov 120   ;;  %v1031_v24 = vld [vmem:[#allocation3 + $0x2] sm:$0xff]  ;;  %vm114_vm0 = vcmask 146432  }
  0x34   :  { %73 = vrot.lane.b32.xlu1 %v3634_v10, %s3917_s3  ;;  %s3921_s10 = smov 1   ;;  %v3789_v20 = vld [vmem:[#allocation6] ss:$0 sps:$4 sm:$0xff]   ;;  %s3922_s11 = smov 116   ;;  %v1040_v27 = vcombine.high %v1031_v24, %v1031_v24  ;;  %vm124_vm1 = vcmask 1041408   ;;  %vm120_vm2 = vcmask 31744  }
  0x35   :  { %v3979_v5 = vsub.s32 %v80_v4, %v3976_v3  ;;  %v3791_v25 = vld [vmem:[#allocation6] ss:$0 sps:$4 sm:$0xff]   ;;  %s3923_s12 = smov 112   ;;  %s3924_s13 = smov 127   ;;  %vm278_vm3 = vcmask 154624   ;;  %vm475_vm4 = vcmask 138240  }
  0x36   :  { %v4038_v31 = vld.sshfl [vmem:[#allocation3 + $0xa] sm:$0x33 pattern:$0x76325410]  ;;  %v3793_v33 = vld [vmem:[#allocation6] ss:$0 sps:$4 sm:$0xff]  }
  0x37   :  { %v84_v9 = vrot.slane %v68_v7, %v3979_v5  ;;  %v91_v13 = vrot.slane %v77_v11, %v3979_v5  ;;  %v665_v19 = vrot.slane %v633_v18, %v3979_v5  ;;  %v672_v23 = vrot.slane %v658_v21, %v3979_v5  ;;  %s3925_s14 = smov 108   ;;  %s3926_s15 = smov 111   ;;  %v3794_v34 = vld [vmem:[#allocation6] ss:$0 sps:$4 sm:$0xff]  }
  0x38   :  { %v4018_v26 = vrot.slane %v1031_v24, %v3979_v5  ;;  %v4028_v29 = vrot.slane %v1040_v27, %v3979_v5  ;;  %v4044_v32 = vcombine.high %v4038_v31, %v4038_v31  ;;  %s3927_s16 = smov 104   ;;  %s3928_s17 = smov 110   ;;  %v3795_v35 = vld [vmem:[#allocation6] ss:$0 sps:$4 sm:$0xff]   ;;  %vm688_vm5 = vcmask 7168  }
  0x39   :  { %102 = vrot.lane.b32.xlu0 %v84_v9, %s3916_s2  ;;  %v92_v12 = vcombine.high %v84_v9, %v84_v9  ;;  %106 = vrot.lane.b32.xlu1 %v91_v13, %s3916_s2  ;;  %v93_v16 = vcombine.high %v91_v13, %v91_v13  ;;  %v673_v22 = vcombine.high %v665_v19, %v665_v19  ;;  %s3929_s18 = smov 100   ;;  %s3930_s19 = smov 109   ;;  %v3796_v36 = vld [vmem:[#allocation6] ss:$0 sps:$4 sm:$0xff]   ;;  %vm1077_vm6 = vcmask 1039360  }
  0x3a   :  { %v4025_v28 = vcombine.high %v4018_v26, %v4018_v26  ;;  %v4036_v30 = vcombine.high %v4028_v29, %v4028_v29  ;;  %s3931_s20 = smov 96   ;;  %vm1280_vm7 = vcmask 908288   ;;  %vm1483_vm8 = vcmask 900096   ;;  %s3934_s21 = smov 80  }
  0x3b   :  { %vm1686_vm9 = vcmask 891904   ;;  %vm1883_vm10 = vcmask 64512   ;;  %vm1928_vm11 = vcmask 1047616   ;;  %s3935_s22 = smov 88   ;;  %s3936_s23 = smov 72   ;;  %vm1981_vm12 = vcmask 1043456  }
  0x3c   :  { %s3937_s24 = smov 64   ;;  %s3938_s25 = smov [#allocation11]  }
  0x3d   :  { %104 = vrot.lane.b32.xlu0 %v92_v12, %s3916_s2  ;;  %110 = vrot.lane.b32.xlu1 %v3635_v14, %s3916_s2  ;;  %s3623_s26 = sshll.u32 %s3938_s25, 4  ;;  %s3624_s26 = int_to_ptr.vmem [resolvable:$true] %s3623_s26 }
  0x3e   :  { %s3882_s27 = scalar_lea.vmem %s3624_s26, 768  ;;  %p3887_p7 = scmp.lt.s32.totalorder %s3624_s26, %s3624_s26 }
  0x3f   :  { %p3883_p6 = scmp.ne.s32.totalorder %s3624_s26, %s3882_s27  ;;  %p3888_p8 = scmp.lt.s32.totalorder %s3882_s27, %s3882_s27 }
  0x41   :  { %112 = vrot.lane.b32.xlu0 %v101_v15, %s3916_s2  ;;  %266 = vrot.lane.b32.xlu1 %v84_v9, %s3918_s7  ;;  %p3889_p9 = por %p3888_p8, %p3887_p7 }
  0x43   :  { %p3890_p10 = pnand %p3889_p9, %p3883_p6 }
  0x45   :  { %108 = vrot.lane.b32.xlu0 %v93_v16, %s3916_s2  ;;  %270 = vrot.lane.b32.xlu1 %v91_v13, %s3918_s7 }
  0x49   :  { %268 = vrot.lane.b32.xlu0 %v92_v12, %s3918_s7  ;;  %274 = vrot.lane.b32.xlu1 %v3635_v14, %s3918_s7 }
  0x4d   :  { %272 = vrot.lane.b32.xlu0 %v93_v16, %s3918_s7  ;;  %463 = vrot.lane.b32.xlu1 %v84_v9, %s3919_s8 }
  0x51   :  { %276 = vrot.lane.b32.xlu0 %v101_v15, %s3918_s7  ;;  %467 = vrot.lane.b32.xlu1 %v91_v13, %s3919_s8 }
  0x55   :  { %465 = vrot.lane.b32.xlu0 %v92_v12, %s3919_s8  ;;  %469 = vrot.lane.b32.xlu1 %v93_v16, %s3919_s8 }
  0x59   :  { %434 = vrot.lane.b32.xlu0 %v3788_v17, %s3920_s9  ;;  %473 = vrot.lane.b32.xlu1 %v101_v15, %s3919_s8 }
  0x5d   :  { %471 = vrot.lane.b32.xlu0 %v3635_v14, %s3919_s8  ;;  %676 = vrot.lane.b32.xlu1 %v92_v12, %s3921_s10 }
  0x61   :  { %674 = vrot.lane.b32.xlu0 %v84_v9, %s3921_s10  ;;  %680 = vrot.lane.b32.xlu1 %v93_v16, %s3921_s10 }
  0x65   :  { %678 = vrot.lane.b32.xlu0 %v91_v13, %s3921_s10  ;;  %637 = vrot.lane.b32.xlu1 %v3789_v20, %s3922_s11 }
  0x69   :  { %682 = vrot.lane.b32.xlu0 %v665_v19, %s3921_s10  ;;  %686 = vrot.lane.b32.xlu1 %v672_v23, %s3921_s10 }
  0x6d   :  { %684 = vrot.lane.b32.xlu0 %v673_v22, %s3921_s10  ;;  %1065 = vrot.lane.b32.xlu1 %v4018_v26, %s3924_s13 }
  0x71   :  { %851 = vrot.lane.b32.xlu0 %v3791_v25, %s3923_s12  ;;  %1069 = vrot.lane.b32.xlu1 %v4028_v29, %s3924_s13 }
  0x75   :  { %1067 = vrot.lane.b32.xlu0 %v4025_v28, %s3924_s13  ;;  %1073 = vrot.lane.b32.xlu1 %v4038_v31, %s3924_s13 }
  0x79   :  { %1071 = vrot.lane.b32.xlu0 %v4036_v30, %s3924_s13  ;;  %1075 = vrot.lane.b32.xlu1 %v4044_v32, %s3924_s13 }
  0x7d   :  { %1036 = vrot.lane.b32.xlu0 %v3793_v33, %s3925_s14  ;;  %1270 = vrot.lane.b32.xlu1 %v4025_v28, %s3926_s15 }
  0x81   :  { %1268 = vrot.lane.b32.xlu0 %v4018_v26, %s3926_s15  ;;  %1239 = vrot.lane.b32.xlu1 %v3794_v34, %s3927_s16 }
  0x85   :  { %1272 = vrot.lane.b32.xlu0 %v4028_v29, %s3926_s15  ;;  %1276 = vrot.lane.b32.xlu1 %v4038_v31, %s3926_s15 }
  0x89   :  { %1274 = vrot.lane.b32.xlu0 %v4036_v30, %s3926_s15  ;;  %1471 = vrot.lane.b32.xlu1 %v4018_v26, %s3928_s17 }
  0x8d   :  { %1278 = vrot.lane.b32.xlu0 %v4044_v32, %s3926_s15  ;;  %1475 = vrot.lane.b32.xlu1 %v4028_v29, %s3928_s17 }
  0x91   :  { %1473 = vrot.lane.b32.xlu0 %v4025_v28, %s3928_s17  ;;  %1479 = vrot.lane.b32.xlu1 %v4038_v31, %s3928_s17 }
  0x95   :  { %1477 = vrot.lane.b32.xlu0 %v4036_v30, %s3928_s17  ;;  %1481 = vrot.lane.b32.xlu1 %v4044_v32, %s3928_s17 }
  0x99   :  { %1442 = vrot.lane.b32.xlu0 %v3795_v35, %s3929_s18  ;;  %1676 = vrot.lane.b32.xlu1 %v4025_v28, %s3930_s19 }
  0x9d   :  { %1674 = vrot.lane.b32.xlu0 %v4018_v26, %s3930_s19  ;;  %1645 = vrot.lane.b32.xlu1 %v3796_v36, %s3931_s20 }
  0xa1   :  { %1678 = vrot.lane.b32.xlu0 %v4028_v29, %s3930_s19  ;;  %1682 = vrot.lane.b32.xlu1 %v4038_v31, %s3930_s19 }
  0xa5   :  { %1680 = vrot.lane.b32.xlu0 %v4036_v30, %s3930_s19 }
  0xa6   :  { %v74_v38 = vpop.permute.xlu1 %73 }
  0xa9   :  { %1684 = vrot.lane.b32.xlu0 %v4044_v32, %s3930_s19 }
  0xab   :  { %v103_v37 = vpop.permute.xlu0 %102  ;;  %v107_v40 = vpop.permute.xlu1 %106 }
  0xaf   :  { %v105_v39 = vpop.permute.xlu0 %104  ;;  %v111_v45 = vpop.permute.xlu1 %110 }
  0xb0   :  { %v116_v41 = vsel %vm114_vm0, %v105_v39, %v107_v40  ;;  %v115_v42 = vsel %vm114_vm0, %v103_v37, %v105_v39  ;;  %v884_v39 = vsel %vm124_vm1, %v4018_v26, 0  ;;  %v890_v26 = vsel %vm124_vm1, %v4028_v29, 0 }
  0xb1   :  { %3636 = vmatprep.subr.msk.bf16.mxu0 %vm124_vm1, %v116_v41  ;;  %v126_v43 = vsel %vm124_vm1, %v115_v42, 0 }
  0xb2   :  { %158 = vmatpush1.bf16.msra.mxu0 %v126_v43 }
  0xb3   :  { %v113_v44 = vpop.permute.xlu0 %112  ;;  %v267_v49 = vpop.permute.xlu1 %266 }
  0xb4   :  { %v119_v46 = vsel %vm114_vm0, %v111_v45, %v113_v44  ;;  %3640 = vmatprep.subr.msk.bf16.mxu0 %vm124_vm1, %v113_v44 }
  0xb5   :  { %3637 = vmatmul.mubr.msk.bf16.vlgmr.msra.gmra.mxu0 %vm120_vm2, %v74_v38  ;;  %v138_v47 = vsel %vm124_vm1, %v119_v46, 0  ;;  %v896_v46 = vsel %vm124_vm1, %v4038_v31, 0 }
  0xb6   :  { %240 = vmatpush1.bf16.msra.mxu0 %v138_v47  ;;  %257 = vmatprep.mubr.bf16.mxu0 %v3915_v6 }
  0xb7   :  { %v109_v48 = vpop.permute.xlu0 %108  ;;  %v271_v54 = vpop.permute.xlu1 %270 }
  0xb8   :  { %v118_v50 = vsel %vm114_vm0, %v109_v48, %v111_v45  ;;  %v117_v51 = vsel %vm114_vm0, %v107_v40, %v109_v48 }
  0xb9   :  { %3638 = vmatprep.subr.msk.bf16.mxu1 %vm124_vm1, %v118_v50  ;;  %v132_v52 = vsel %vm124_vm1, %v117_v51, 0 }
  0xba   :  { %199 = vmatpush1.bf16.msra.mxu1 %v132_v52 }
  0xbb   :  { %v269_v53 = vpop.permute.xlu0 %268  ;;  %v275_v59 = vpop.permute.xlu1 %274 }
  0xbc   :  { %v279_v55 = vsel %vm278_vm3, %v267_v49, %v269_v53  ;;  %v280_v56 = vsel %vm278_vm3, %v269_v53, %v271_v54 }
  0xbd   :  { %3639 = vmatmul.mubr.msk.bf16.vlgmr.msra.gmra.mxu1 %vm120_vm2, %v74_v38  ;;  %3641 = vmatmul.mubr.msk.bf16.vlgmr.msra.gmra.mxu0 %vm120_vm2, %v74_v38  ;;  %v288_v57 = vsel %vm124_vm1, %v279_v55, 0 }
  0xbe   :  { %3642 = vmatprep.subr.msk.bf16.mxu1 %vm124_vm1, %v280_v56  ;;  %337 = vmatprep.mubr.bf16.mxu1 %v3915_v6 }
  0xbf   :  { %320 = vmatpush1.bf16.msra.mxu1 %v288_v57  ;;  %v273_v58 = vpop.permute.xlu0 %272  ;;  %378 = vmatprep.mubr.bf16.mxu0 %v3915_v6  ;;  %v464_v0 = vpop.permute.xlu1 %463 }
  0xc0   :  { %v281_v60 = vsel %vm278_vm3, %v271_v54, %v273_v58  ;;  %v282_v61 = vsel %vm278_vm3, %v273_v58, %v275_v59 }
  0xc1   :  { %3644 = vmatprep.subr.msk.bf16.mxu0 %vm124_vm1, %v282_v61  ;;  %v294_v62 = vsel %vm124_vm1, %v281_v60, 0 }
  0xc2   :  { %361 = vmatpush1.bf16.msra.mxu0 %v294_v62 }
  0xc3   :  { %v277_v63 = vpop.permute.xlu0 %276  ;;  %v468_v5 = vpop.permute.xlu1 %467 }
  0xc4   :  { %v283_v1 = vsel %vm278_vm3, %v275_v59, %v277_v63  ;;  %3646 = vmatprep.subr.msk.bf16.mxu1 %vm124_vm1, %v277_v63 }
  0xc5   :  { %3643 = vmatmul.mubr.msk.bf16.vlgmr.msra.gmra.mxu1 %vm120_vm2, %v3983_v8  ;;  %3645 = vmatmul.mubr.msk.bf16.vlgmr.msra.gmra.mxu0 %vm120_vm2, %v3983_v8  ;;  %v300_v2 = vsel %vm124_vm1, %v283_v1, 0 }
  0xc6   :  { %402 = vmatpush1.bf16.msra.mxu1 %v300_v2  ;;  %419 = vmatprep.mubr.bf16.mxu1 %v3915_v6 }
  0xc7   :  { %v466_v4 = vpop.permute.xlu0 %465  ;;  %534 = vmatprep.mubr.bf16.mxu0 %v3915_v6  ;;  %v470_v12 = vpop.permute.xlu1 %469 }
  0xc8   :  { %v476_v7 = vsel %vm475_vm4, %v464_v0, %v466_v4  ;;  %v477_v9 = vsel %vm475_vm4, %v466_v4, %v468_v5  ;;  %v478_v13 = vsel %vm475_vm4, %v468_v5, %v470_v12 }
  0xc9   :  { %3650 = vmatprep.subr.msk.bf16.mxu0 %vm124_vm1, %v477_v9  ;;  %v485_v10 = vsel %vm124_vm1, %v476_v7, 0 }
  0xca   :  { %517 = vmatpush1.bf16.msra.mxu0 %v485_v10 }
  0xcb   :  { %v435_v11 = vpop.permute.xlu0 %434  ;;  %v474_v15 = vpop.permute.xlu1 %473 }
  0xcc   :  { %3654 = vmatprep.subr.msk.bf16.mxu0 %vm124_vm1, %v474_v15 }
  0xcd   :  { %3647 = vmatmul.mubr.msk.bf16.vlgmr.msra.gmra.mxu1 %vm120_vm2, %v3983_v8  ;;  %3651 = vmatmul.mubr.msk.bf16.vlgmr.msra.gmra.mxu0 %vm120_vm2, %v435_v11  ;;  %v491_v8 = vsel %vm124_vm1, %v478_v13, 0 }
  0xce   :  { %575 = vmatprep.mubr.bf16.mxu1 %v3915_v6  ;;  %616 = vmatprep.mubr.bf16.mxu0 %v3915_v6 }
  0xcf   :  { %v472_v14 = vpop.permute.xlu0 %471  ;;  %v677_v20 = vpop.permute.xlu1 %676 }
  0xd0   :  { %v480_v16 = vsel %vm475_vm4, %v472_v14, %v474_v15  ;;  %v479_v17 = vsel %vm475_vm4, %v470_v12, %v472_v14 }
  0xd1   :  { %3652 = vmatprep.subr.msk.bf16.mxu1 %vm124_vm1, %v479_v17  ;;  %v497_v18 = vsel %vm124_vm1, %v480_v16, 0 }
  0xd2   :  { %558 = vmatpush1.bf16.msra.mxu1 %v491_v8  ;;  %599 = vmatpush1.bf16.msra.mxu0 %v497_v18 }
  0xd3   :  { %v675_v19 = vpop.permute.xlu0 %674  ;;  %v681_v23 = vpop.permute.xlu1 %680 }
  0xd4   :  { %v689_v21 = vsel %vm688_vm5, %v675_v19, %v677_v20 }
  0xd5   :  { %3653 = vmatmul.mubr.msk.bf16.vlgmr.msra.gmra.mxu1 %vm120_vm2, %v435_v11  ;;  %3655 = vmatmul.mubr.msk.bf16.vlgmr.msra.gmra.mxu0 %vm120_vm2, %v435_v11  ;;  %v699_v25 = vsel %vm124_vm1, %v689_v21, 0 }
  0xd6   :  { %748 = vmatprep.mubr.bf16.mxu1 %v3915_v6  ;;  %789 = vmatprep.mubr.bf16.mxu0 %v3915_v6 }
  0xd7   :  { %v679_v22 = vpop.permute.xlu0 %678  ;;  %v638_v34 = vpop.permute.xlu1 %637 }
  0xd8   :  { %v690_v24 = vsel %vm688_vm5, %v677_v20, %v679_v22  ;;  %v691_v27 = vsel %vm688_vm5, %v679_v22, %v681_v23 }
  0xd9   :  { %3657 = vmatprep.subr.msk.bf16.mxu1 %vm124_vm1, %v690_v24  ;;  %v705_v36 = vsel %vm124_vm1, %v691_v27, 0 }
  0xda   :  { %731 = vmatpush1.bf16.msra.mxu1 %v699_v25 }
  0xdb   :  { %v683_v33 = vpop.permute.xlu0 %682  ;;  %v687_v38 = vpop.permute.xlu1 %686 }
  0xdc   :  { %v692_v35 = vsel %vm688_vm5, %v681_v23, %v683_v33 }
  0xdd   :  { %3658 = vmatmul.mubr.msk.bf16.vlgmr.msra.gmra.mxu1 %vm120_vm2, %v638_v34  ;;  %3659 = vmatprep.subr.msk.bf16.mxu0 %vm124_vm1, %v692_v35 }
  0xde   :  { %772 = vmatpush1.bf16.msra.mxu0 %v705_v36  ;;  %830 = vmatprep.mubr.bf16.mxu1 %v3915_v6 }
  0xdf   :  { %v685_v37 = vpop.permute.xlu0 %684  ;;  %3665 = vmatprep.subr.msk.bf16.mxu0 %vm124_vm1, %v4025_v28  ;;  %v1066_v44 = vpop.permute.xlu1 %1065 }
  0xe0   :  { %v693_v40 = vsel %vm688_vm5, %v683_v33, %v685_v37  ;;  %v694_v41 = vsel %vm688_vm5, %v685_v37, %v687_v38 }
  0xe1   :  { %3660 = vmatmul.mubr.msk.bf16.vlgmr.msra.gmra.mxu0 %vm120_vm2, %v638_v34  ;;  %3661 = vmatprep.subr.msk.bf16.mxu1 %vm124_vm1, %v694_v41  ;;  %v711_v42 = vsel %vm124_vm1, %v693_v40, 0 }
  0xe2   :  { %813 = vmatpush1.bf16.msra.mxu1 %v711_v42  ;;  %916 = vmatpush1.bf16.msra.mxu0 %v884_v39 }
  0xe3   :  { %v852_v43 = vpop.permute.xlu0 %851  ;;  %3667 = vmatprep.subr.msk.bf16.mxu1 %vm124_vm1, %v4036_v30  ;;  %933 = vmatprep.mubr.bf16.mxu0 %v3915_v6  ;;  %v1070_v45 = vpop.permute.xlu1 %1069 }
  0xe4   :  { %3669 = vmatprep.subr.msk.bf16.mxu0 %vm124_vm1, %v4044_v32 }
  0xe5   :  { %3662 = vmatmul.mubr.msk.bf16.vlgmr.msra.gmra.mxu1 %vm120_vm2, %v638_v34 }
  0xe6   :  { %957 = vmatpush1.bf16.msra.mxu1 %v890_v26  ;;  %974 = vmatprep.mubr.bf16.mxu1 %v3915_v6 }
  0xe7   :  { %v1068_v28 = vpop.permute.xlu0 %1067  ;;  %v1074_v47 = vpop.permute.xlu1 %1073 }
  0xe8   :  { %v1079_v30 = vsel %vm1077_vm6, %v1068_v28, %v1070_v45  ;;  %v1078_v29 = vsel %vm1077_vm6, %v1066_v44, %v1068_v28 }
  0xe9   :  { %3666 = vmatmul.mubr.msk.bf16.vlgmr.msra.gmra.mxu0 %vm120_vm2, %v852_v43  ;;  %3673 = vmatprep.subr.msk.bf16.mxu1 %vm124_vm1, %v1079_v30  ;;  %v1087_v49 = vsel %vm124_vm1, %v1078_v29, 0 }
  0xea   :  { %998 = vmatpush1.bf16.msra.mxu0 %v896_v46  ;;  %1015 = vmatprep.mubr.bf16.mxu0 %v3915_v6 }
  0xeb   :  { %v1072_v32 = vpop.permute.xlu0 %1071  ;;  %v1076_v51 = vpop.permute.xlu1 %1075 }
  0xec   :  { %v1081_v48 = vsel %vm1077_vm6, %v1072_v32, %v1074_v47  ;;  %v1080_v31 = vsel %vm1077_vm6, %v1070_v45, %v1072_v32  ;;  %v1082_v53 = vsel %vm1077_vm6, %v1074_v47, %v1076_v51 }
  0xed   :  { %3668 = vmatmul.mubr.msk.bf16.vlgmr.msra.gmra.mxu1 %vm120_vm2, %v852_v43  ;;  %3675 = vmatprep.subr.msk.bf16.mxu0 %vm124_vm1, %v1081_v48  ;;  %v1093_v52 = vsel %vm124_vm1, %v1080_v31, 0  ;;  %v1099_v56 = vsel %vm124_vm1, %v1082_v53, 0 }
  0xee   :  { %1119 = vmatpush1.bf16.msra.mxu1 %v1087_v49  ;;  %1136 = vmatprep.mubr.bf16.mxu1 %v3915_v6 }
  0xef   :  { %v1037_v50 = vpop.permute.xlu0 %1036  ;;  %3677 = vmatprep.subr.msk.bf16.mxu1 %vm124_vm1, %v1076_v51  ;;  %v1271_v55 = vpop.permute.xlu1 %1270 }
  0xf1   :  { %3670 = vmatmul.mubr.msk.bf16.vlgmr.msra.gmra.mxu0 %vm120_vm2, %v852_v43 }
  0xf2   :  { %1160 = vmatpush1.bf16.msra.mxu0 %v1093_v52  ;;  %1177 = vmatprep.mubr.bf16.mxu0 %v3915_v6 }
  0xf3   :  { %v1269_v54 = vpop.permute.xlu0 %1268  ;;  %v1240_v59 = vpop.permute.xlu1 %1239 }
  0xf4   :  { %v1281_v57 = vsel %vm1280_vm7, %v1269_v54, %v1271_v55 }
  0xf5   :  { %3674 = vmatmul.mubr.msk.bf16.vlgmr.msra.gmra.mxu1 %vm120_vm2, %v1037_v50  ;;  %v1290_v61 = vsel %vm124_vm1, %v1281_v57, 0 }
  0xf6   :  { %1201 = vmatpush1.bf16.msra.mxu1 %v1099_v56  ;;  %1218 = vmatprep.mubr.bf16.mxu1 %v3915_v6 }
  0xf7   :  { %v1273_v58 = vpop.permute.xlu0 %1272  ;;  %v1277_v63 = vpop.permute.xlu1 %1276 }
  0xf8   :  { %v1282_v60 = vsel %vm1280_vm7, %v1271_v55, %v1273_v58 }
  0xf9   :  { %3676 = vmatmul.mubr.msk.bf16.vlgmr.msra.gmra.mxu0 %vm120_vm2, %v1037_v50  ;;  %3681 = vmatprep.subr.msk.bf16.mxu0 %vm124_vm1, %v1282_v60 }
  0xfa   :  { %1322 = vmatpush1.bf16.msra.mxu0 %v1290_v61  ;;  %1339 = vmatprep.mubr.bf16.mxu0 %v3915_v6 }
  0xfb   :  { %v1275_v62 = vpop.permute.xlu0 %1274  ;;  %v1472_v5 = vpop.permute.xlu1 %1471 }
  0xfc   :  { %v1283_v0 = vsel %vm1280_vm7, %v1273_v58, %v1275_v62  ;;  %v1284_v1 = vsel %vm1280_vm7, %v1275_v62, %v1277_v63 }
  0xfd   :  { %v1296_v2 = vsel %vm124_vm1, %v1283_v0, 0  ;;  %3678 = vmatmul.mubr.msk.bf16.vlgmr.msra.gmra.mxu1 %vm120_vm2, %v1037_v50  ;;  %3683 = vmatprep.subr.msk.bf16.mxu1 %vm124_vm1, %v1284_v1 }
  0xfe   :  { %1363 = vmatpush1.bf16.msra.mxu1 %v1296_v2  ;;  %1380 = vmatprep.mubr.bf16.mxu1 %v3915_v6 }
  0xff   :  { %v1279_v4 = vpop.permute.xlu0 %1278  ;;  %v1476_v11 = vpop.permute.xlu1 %1475 }
 0x100   :  { %v1285_v7 = vsel %vm1280_vm7, %v1277_v63, %v1279_v4  ;;  %3685 = vmatprep.subr.msk.bf16.mxu0 %vm124_vm1, %v1279_v4 }
 0x101   :  { %v1302_v9 = vsel %vm124_vm1, %v1285_v7, 0  ;;  %3682 = vmatmul.mubr.msk.bf16.vlgmr.msra.gmra.mxu0 %vm120_vm2, %v1240_v59 }
 0x102   :  { %1404 = vmatpush1.bf16.msra.mxu0 %v1302_v9  ;;  %1421 = vmatprep.mubr.bf16.mxu0 %v3915_v6 }
 0x103   :  { %v1474_v10 = vpop.permute.xlu0 %1473  ;;  %v1480_v16 = vpop.permute.xlu1 %1479 }
 0x104   :  { %v1484_v12 = vsel %vm1483_vm8, %v1472_v5, %v1474_v10  ;;  %v1485_v13 = vsel %vm1483_vm8, %v1474_v10, %v1476_v11 }
 0x105   :  { %v1493_v14 = vsel %vm124_vm1, %v1484_v12, 0  ;;  %3684 = vmatmul.mubr.msk.bf16.vlgmr.msra.gmra.mxu1 %vm120_vm2, %v1240_v59  ;;  %3689 = vmatprep.subr.msk.bf16.mxu1 %vm124_vm1, %v1485_v13 }
 0x106   :  { %1525 = vmatpush1.bf16.msra.mxu1 %v1493_v14  ;;  %1542 = vmatprep.mubr.bf16.mxu1 %v3915_v6 }
 0x107   :  { %v1478_v15 = vpop.permute.xlu0 %1477  ;;  %v1482_v20 = vpop.permute.xlu1 %1481 }
 0x108   :  { %v1486_v17 = vsel %vm1483_vm8, %v1476_v11, %v1478_v15  ;;  %v1487_v8 = vsel %vm1483_vm8, %v1478_v15, %v1480_v16  ;;  %v1488_v21 = vsel %vm1483_vm8, %v1480_v16, %v1482_v20  ;;  %3693 = vmatprep.subr.msk.bf16.mxu1 %vm124_vm1, %v1482_v20 }
 0x109   :  { %v1499_v18 = vsel %vm124_vm1, %v1486_v17, 0  ;;  %3686 = vmatmul.mubr.msk.bf16.vlgmr.msra.gmra.mxu0 %vm120_vm2, %v1240_v59  ;;  %3691 = vmatprep.subr.msk.bf16.mxu0 %vm124_vm1, %v1487_v8  ;;  %v1505_v22 = vsel %vm124_vm1, %v1488_v21, 0 }
 0x10a   :  { %1566 = vmatpush1.bf16.msra.mxu0 %v1499_v18  ;;  %1583 = vmatprep.mubr.bf16.mxu0 %v3915_v6 }
 0x10b   :  { %v1443_v19 = vpop.permute.xlu0 %1442  ;;  %v1677_v24 = vpop.permute.xlu1 %1676 }
 0x10d   :  { %3690 = vmatmul.mubr.msk.bf16.vlgmr.msra.gmra.mxu1 %vm120_vm2, %v1443_v19 }
 0x10e   :  { %1607 = vmatpush1.bf16.msra.mxu1 %v1505_v22  ;;  %1624 = vmatprep.mubr.bf16.mxu1 %v3915_v6 }
 0x10f   :  { %v1675_v23 = vpop.permute.xlu0 %1674  ;;  %v1646_v33 = vpop.permute.xlu1 %1645 }
 0x110   :  { %v1687_v25 = vsel %vm1686_vm9, %v1675_v23, %v1677_v24 }
 0x111   :  { %3692 = vmatmul.mubr.msk.bf16.vlgmr.msra.gmra.mxu0 %vm120_vm2, %v1443_v19  ;;  %v1696_v35 = vsel %vm124_vm1, %v1687_v25, 0 }
 0x112   :  { %1745 = vmatprep.mubr.bf16.mxu0 %v3915_v6 }
 0x113   :  { %v1679_v27 = vpop.permute.xlu0 %1678  ;;  %v1683_v37 = vpop.permute.xlu1 %1682 }
 0x114   :  { %v1688_v34 = vsel %vm1686_vm9, %v1677_v24, %v1679_v27 }
 0x115   :  { %3694 = vmatmul.mubr.msk.bf16.vlgmr.msra.gmra.mxu1 %vm120_vm2, %v1443_v19  ;;  %3697 = vmatprep.subr.msk.bf16.mxu0 %vm124_vm1, %v1688_v34 }
 0x116   :  { %1728 = vmatpush1.bf16.msra.mxu0 %v1696_v35  ;;  %1786 = vmatprep.mubr.bf16.mxu1 %v3915_v6 }
 0x117   :  { %v1681_v36 = vpop.permute.xlu0 %1680 }
 0x118   :  { %v1689_v38 = vsel %vm1686_vm9, %v1679_v27, %v1681_v36  ;;  %v1690_v39 = vsel %vm1686_vm9, %v1681_v36, %v1683_v37 }
 0x119   :  { %v1702_v40 = vsel %vm124_vm1, %v1689_v38, 0  ;;  %3698 = vmatmul.mubr.msk.bf16.vlgmr.msra.gmra.mxu0 %vm120_vm2, %v1646_v33  ;;  %3699 = vmatprep.subr.msk.bf16.mxu1 %vm124_vm1, %v1690_v39 }
 0x11a   :  { %1769 = vmatpush1.bf16.msra.mxu1 %v1702_v40  ;;  %1827 = vmatprep.mubr.bf16.mxu0 %v3915_v6 }
 0x11b   :  { %v1685_v41 = vpop.permute.xlu0 %1684 }
 0x11c   :  { %v1691_v42 = vsel %vm1686_vm9, %v1683_v37, %v1685_v41  ;;  %3701 = vmatprep.subr.msk.bf16.mxu0 %vm124_vm1, %v1685_v41 }
 0x11d   :  { %v1708_v43 = vsel %vm124_vm1, %v1691_v42, 0  ;;  %3700 = vmatmul.mubr.msk.bf16.vlgmr.msra.gmra.mxu1 %vm120_vm2, %v1646_v33 }
 0x11e   :  { %1810 = vmatpush1.bf16.msra.mxu0 %v1708_v43  ;;  %2032 = vmatprep.mubr.bf16.mxu1 %v3915_v6 }
 0x121   :  { %3702 = vmatmul.mubr.msk.bf16.vlgmr.msra.gmra.mxu0 %vm120_vm2, %v1646_v33 }
 0x122   :  { %2073 = vmatprep.mubr.bf16.mxu0 %v3915_v6 }
 0x175   :  { %v177_v44 = vpop.f32.mrf.mxu0 }
 0x177   :  { %v179_v26 = vpop.f32.mrf.mxu0 }
 0x179   :  { %v181_v28 = vpop.f32.mrf.mxu0 }
 0x17b   :  { %v182_v45 = vpop.f32.mrf.mxu0 }
 0x17d   :  { %v218_v46 = vpop.f32.mrf.mxu1  ;;  %v259_v30 = vpop.f32.mrf.mxu0 }
 0x17f   :  { %v220_v29 = vpop.f32.mrf.mxu1  ;;  %v261_v32 = vpop.f32.mrf.mxu0 }
 0x181   :  { %v222_v47 = vpop.f32.mrf.mxu1  ;;  %v263_v48 = vpop.f32.mrf.mxu0 }
 0x183   :  { %v223_v49 = vpop.f32.mrf.mxu1  ;;  %v264_v31 = vpop.f32.mrf.mxu0 }
 0x185   :  { %v339_v50 = vpop.f32.mrf.mxu1  ;;  %v380_v51 = vpop.f32.mrf.mxu0 }
 0x186   :  { %v340_v52 = vadd.f32 %v339_v50, %v177_v44  ;;  %v4246_v53 = vadd.f32 %v380_v51, %v218_v46 }
 0x187   :  { %v341_v54 = vpop.f32.mrf.mxu1  ;;  %v382_v55 = vpop.f32.mrf.mxu0 }
 0x188   :  { %v342_v56 = vadd.f32 %v341_v54, %v179_v26  ;;  %v4248_v57 = vadd.f32 %v382_v55, %v220_v29 }
 0x189   :  { %v343_v58 = vpop.f32.mrf.mxu1  ;;  %v384_v59 = vpop.f32.mrf.mxu0 }
 0x18b   :  { %v344_v60 = vpop.f32.mrf.mxu1  ;;  %v385_v61 = vpop.f32.mrf.mxu0 }
 0x18d   :  { %v421_v62 = vpop.f32.mrf.mxu1  ;;  %v536_v63 = vpop.f32.mrf.mxu0 }
 0x18e   :  { %v422_v0 = vadd.f32 %v421_v62, %v259_v30  ;;  %v4250_v1 = vadd.f32 %v536_v63, %v340_v52 }
 0x18f   :  { %v423_v2 = vpop.f32.mrf.mxu1  ;;  %v538_v4 = vpop.f32.mrf.mxu0 }
 0x190   :  { %v424_v5 = vadd.f32 %v423_v2, %v261_v32  ;;  %v4252_v7 = vadd.f32 %v538_v4, %v342_v56 }
 0x191   :  { %v425_v9 = vpop.f32.mrf.mxu1  ;;  %v540_v10 = vpop.f32.mrf.mxu0 }
 0x193   :  { %v426_v11 = vpop.f32.mrf.mxu1  ;;  %v541_v12 = vpop.f32.mrf.mxu0 }
 0x195   :  { %v4254_v13 = vpop.f32.mrf.mxu1  ;;  %v618_v14 = vpop.f32.mrf.mxu0 }
 0x196   :  { %v4256_v15 = vadd.f32 %v618_v14, %v422_v0 }
 0x197   :  { %v4258_v16 = vpop.f32.mrf.mxu1  ;;  %v620_v17 = vpop.f32.mrf.mxu0 }
 0x198   :  { %v4260_v8 = vadd.f32 %v620_v17, %v424_v5 }
 0x199   :  { %v581_v18 = vpop.f32.mrf.mxu1  ;;  %v622_v19 = vpop.f32.mrf.mxu0 }
 0x19b   :  { %v582_v20 = vpop.f32.mrf.mxu1  ;;  %v623_v21 = vpop.f32.mrf.mxu0 }
 0x19c   :  { %v627_v21 = vadd.f32 %v4254_v13, %v4246_v53 }
 0x19d   :  { %v750_v22 = vpop.f32.mrf.mxu1 }
 0x19e   :  { %v839_v18 = vadd.f32 %v750_v22, %v4250_v1 }
 0x19f   :  { %v752_v23 = vpop.f32.mrf.mxu1 }
 0x1a1   :  { %v754_v24 = vpop.f32.mrf.mxu1  ;;  %v791_v25 = vpop.f32.mrf.mxu0 }
 0x1a2   :  { %v840_v24 = vadd.f32 %v752_v23, %v4252_v7 }
 0x1a3   :  { %v755_v27 = vpop.f32.mrf.mxu1  ;;  %v793_v33 = vpop.f32.mrf.mxu0 }
 0x1a5   :  { %v795_v34 = vpop.f32.mrf.mxu0  ;;  %v4262_v35 = vpop.f32.mrf.mxu1 }
 0x1a7   :  { %v796_v36 = vpop.f32.mrf.mxu0  ;;  %v4264_v37 = vpop.f32.mrf.mxu1 }
 0x1a9   :  { %v836_v38 = vpop.f32.mrf.mxu1  ;;  %v935_v39 = vpop.f32.mrf.mxu0 }
 0x1aa   :  { %v1024_v27 = vadd.f32 %v935_v39, %v839_v18  ;;  %v1845_v38 = vsub.s32 0, %v3976_v3 }
 0x1ab   :  { %v837_v40 = vpop.f32.mrf.mxu1  ;;  %v937_v41 = vpop.f32.mrf.mxu0 }
 0x1ac   :  { %v628_v40 = vadd.f32 %v4258_v16, %v4248_v57 }
 0x1ad   :  { %v939_v42 = vpop.f32.mrf.mxu0  ;;  %v976_v43 = vpop.f32.mrf.mxu1 }
 0x1ae   :  { %v841_v42 = vadd.f32 %v791_v25, %v627_v21 }
 0x1af   :  { %v940_v44 = vpop.f32.mrf.mxu0  ;;  %v978_v26 = vpop.f32.mrf.mxu1 }
 0x1b0   :  { %v1025_v44 = vadd.f32 %v937_v41, %v840_v24  ;;  %v1026_v53 = vadd.f32 %v976_v43, %v841_v42  ;;  %v843_v41 = vadd.f32 %v4262_v35, %v4256_v15 }
 0x1b1   :  { %v980_v28 = vpop.f32.mrf.mxu1  ;;  %v4266_v45 = vpop.f32.mrf.mxu0 }
 0x1b3   :  { %v981_v46 = vpop.f32.mrf.mxu1  ;;  %v4268_v30 = vpop.f32.mrf.mxu0 }
 0x1b4   :  { %v66_v46 = vld [vmem:[#allocation9] sm:$0x3f] }
 0x1b5   :  { %v1021_v29 = vpop.f32.mrf.mxu0  ;;  %v1138_v32 = vpop.f32.mrf.mxu1 }
 0x1b6   :  { %v1227_v28 = vadd.f32 %v1138_v32, %v1024_v27  ;;  %v1849_v29 = vsub.s32 1, %v3976_v3  ;;  %v844_v32 = vadd.f32 %v4264_v37, %v4260_v8 }
 0x1b7   :  { %v1022_v47 = vpop.f32.mrf.mxu0  ;;  %v1140_v48 = vpop.f32.mrf.mxu1 }
 0x1b8   :  { %v842_v47 = vadd.f32 %v793_v33, %v628_v40  ;;  %v1228_v13 = vadd.f32 %v1140_v48, %v1025_v44  ;;  %v4293_v48 = vrot.slane %v66_v46, %v1849_v29 }
 0x1b9   :  { %v1142_v49 = vpop.f32.mrf.mxu1  ;;  %v1179_v31 = vpop.f32.mrf.mxu0 }
 0x1ba   :  { %v4286_v49 = vrot.slane %v66_v46, %v1845_v38  ;;  %v1229_v57 = vadd.f32 %v1179_v31, %v1026_v53  ;;  %v1029_v31 = vadd.f32 %v4268_v30, %v844_v32  ;;  %v1865_v30 = vsub.s32 5, %v3976_v3 }
 0x1bb   :  { %v1143_v50 = vpop.f32.mrf.mxu1  ;;  %v1181_v51 = vpop.f32.mrf.mxu0 }
 0x1bc   :  { %v1853_v50 = vsub.s32 2, %v3976_v3  ;;  %v4322_v44 = vrot.slane %v66_v46, %v1865_v30 }
 0x1bd   :  { %v1183_v52 = vpop.f32.mrf.mxu0  ;;  %v4270_v54 = vpop.f32.mrf.mxu1 }
 0x1be   :  { %v1027_v52 = vadd.f32 %v978_v26, %v842_v47  ;;  %v1028_v26 = vadd.f32 %v4266_v45, %v843_v41  ;;  %v4300_v35 = vrot.slane %v66_v46, %v1853_v50  ;;  %v1861_v45 = vsub.s32 4, %v3976_v3 }
 0x1bf   :  { %v1184_v55 = vpop.f32.mrf.mxu0  ;;  %v4272_v56 = vpop.f32.mrf.mxu1 }
 0x1c0   :  { %v1857_v55 = vsub.s32 3, %v3976_v3  ;;  %v4320_v42 = vrot.slane %v66_v46, %v1861_v45 }
 0x1c1   :  { %v1224_v58 = vpop.f32.mrf.mxu1  ;;  %v1341_v59 = vpop.f32.mrf.mxu0 }
 0x1c2   :  { %v1430_v7 = vadd.f32 %v1341_v59, %v1227_v28  ;;  %v1230_v58 = vadd.f32 %v1181_v51, %v1027_v52  ;;  %v1231_v51 = vadd.f32 %v4270_v54, %v1028_v26  ;;  %v4333_v26 = vld [vmem:[#allocation8] sm:$0xf] }
 0x1c3   :  { %v1225_v60 = vpop.f32.mrf.mxu1  ;;  %v1343_v61 = vpop.f32.mrf.mxu0 }
 0x1c4   :  { %v1431_v16 = vadd.f32 %v1343_v61, %v1228_v13 }
 0x1c5   :  { %v1345_v62 = vpop.f32.mrf.mxu0  ;;  %v1382_v63 = vpop.f32.mrf.mxu1 }
 0x1c6   :  { %v1432_v59 = vadd.f32 %v1382_v63, %v1229_v57  ;;  %v1232_v63 = vadd.f32 %v4272_v56, %v1029_v31  ;;  %v4337_v31 = vcombine.low %v4333_v26, %v4333_v26 }
 0x1c7   :  { %v1346_v0 = vpop.f32.mrf.mxu0  ;;  %v1384_v2 = vpop.f32.mrf.mxu1 }
 0x1c8   :  { %v1433_v8 = vadd.f32 %v1384_v2, %v1230_v58 }
 0x1c9   :  { %v1386_v4 = vpop.f32.mrf.mxu1  ;;  %v4274_v5 = vpop.f32.mrf.mxu0 }
 0x1ca   :  { %v1434_v18 = vadd.f32 %v4274_v5, %v1231_v51 }
 0x1cb   :  { %v1387_v9 = vpop.f32.mrf.mxu1  ;;  %v4276_v10 = vpop.f32.mrf.mxu0 }
 0x1cc   :  { %v1435_v54 = vadd.f32 %v4276_v10, %v1232_v63 }
 0x1cd   :  { %v1427_v11 = vpop.f32.mrf.mxu0  ;;  %v1544_v12 = vpop.f32.mrf.mxu1 }
 0x1ce   :  { %v1633_v25 = vadd.f32 %v1544_v12, %v1430_v7 }
 0x1cf   :  { %v1428_v14 = vpop.f32.mrf.mxu0  ;;  %v1546_v17 = vpop.f32.mrf.mxu1 }
 0x1d0   :  { %v1634_v60 = vadd.f32 %v1546_v17, %v1431_v16  ;;  %v4314_v17 = vrot.slane %v66_v46, %v1857_v55 }
 0x1d1   :  { %v1548_v19 = vpop.f32.mrf.mxu1  ;;  %v1585_v20 = vpop.f32.mrf.mxu0 }
 0x1d2   :  { %v1635_v37 = vadd.f32 %v1585_v20, %v1432_v59  ;;  %v3932_v59 = vmov 0.0  }
 0x1d3   :  { %v1549_v34 = vpop.f32.mrf.mxu1  ;;  %v1587_v36 = vpop.f32.mrf.mxu0  ;;  %1929 = vst.msk [vmem:[#allocation2 + $0x30] sm:$0xff] %vm1928_vm11, %v3932_v59 }
 0x1d4   :  { %v1636_v12 = vadd.f32 %v1587_v36, %v1433_v8 }
 0x1d5   :  { %v1589_v1 = vpop.f32.mrf.mxu0  ;;  %v1626_v22 = vpop.f32.mrf.mxu1 }
 0x1d6   :  { %v1637_v34 = vadd.f32 %v1626_v22, %v1434_v18 }
 0x1d7   :  { %v1590_v23 = vpop.f32.mrf.mxu0  ;;  %v1628_v39 = vpop.f32.mrf.mxu1 }
 0x1d8   :  { %v1638_v36 = vadd.f32 %v1628_v39, %v1435_v54 }
 0x1d9   :  { %v1630_v33 = vpop.f32.mrf.mxu1  ;;  %v1747_v43 = vpop.f32.mrf.mxu0 }
 0x1da   :  { %v4296_v62 = vadd.f32 %v1747_v43, %v1633_v25 }
 0x1db   :  { %v1631_v61 = vpop.f32.mrf.mxu1  ;;  %v1749_v15 = vpop.f32.mrf.mxu0 }
 0x1dc   :  { %v1873_v0 = vmul.f32 %v4286_v49, %v4296_v62  ;;  %v4304_v4 = vadd.f32 %v1749_v15, %v1634_v60  ;;  %v3933_v60 = vmov 0.0|0.0  }
 0x1dd   :  { %v1751_v9 = vpop.f32.mrf.mxu0  ;;  %v1788_v11 = vpop.f32.mrf.mxu1 }
 0x1de   :  { %v1874_v2 = vmul.f32 %v4293_v48, %v4304_v4  ;;  %v4312_v14 = vadd.f32 %v1788_v11, %v1635_v37  ;;  %v1888_v19 = vmul.f32 %v1873_v0, %v1873_v0 }
 0x1df   :  { %v1752_v56 = vpop.f32.mrf.mxu0  ;;  %v1790_v20 = vpop.f32.mrf.mxu1 }
 0x1e0   :  { %v1879_v21 = vadd.f32 %v1874_v2, %v1873_v0  ;;  %v1889_v24 = vmul.f32 %v1874_v2, %v1874_v2  ;;  %v1875_v3 = vmul.f32 %v4300_v35, %v4312_v14  ;;  %v1839_v27 = vadd.f32 %v1790_v20, %v1636_v12 }
 0x1e1   :  { %v1792_v38 = vpop.f32.mrf.mxu1  ;;  %v1829_v40 = vpop.f32.mrf.mxu0 }
 0x1e2   :  { %v1894_v5 = vadd.f32 %v1889_v24, %v1888_v19  ;;  %v1880_v28 = vadd.f32 %v1879_v21, %v1875_v3  ;;  %v1890_v10 = vmul.f32 %v1875_v3, %v1875_v3  ;;  %v1876_v1 = vmul.f32 %v4314_v17, %v1839_v27 }
 0x1e3   :  { %v4325_v29 = vadd.f32 %v1829_v40, %v1637_v34  ;;  %v1793_v47 = vpop.f32.mrf.mxu1  ;;  %v1831_v53 = vpop.f32.mrf.mxu0 }
 0x1e4   :  { %v1895_v13 = vadd.f32 %v1894_v5, %v1890_v10  ;;  %v1881_v7 = vadd.f32 %v1880_v28, %v1876_v1  ;;  %v1891_v23 = vmul.f32 %v1876_v1, %v1876_v1  ;;  %v1841_v22 = vadd.f32 %v1831_v53, %v1638_v36 }
 0x1e5   :  { %v1877_v39 = vmul.f32 %v4320_v42, %v4325_v29  ;;  %v1833_v50 = vpop.f32.mrf.mxu0 }
 0x1e6   :  { %v1878_v46 = vmul.f32 %v4322_v44, %v1841_v22  ;;  %v1896_v52 = vadd.f32 %v1895_v13, %v1891_v23 }
 0x1e7   :  { %v1892_v57 = vmul.f32 %v1877_v39, %v1877_v39  ;;  %v1834_v16 = vpop.f32.mrf.mxu0  ;;  %v1882_v25 = vadd.f32 %v1881_v7, %v1877_v39 }
 0x1e8   :  { %v1884_v41 = vsel %vm1883_vm10, %v1878_v46, 0.0  ;;  %v1893_v32 = vmul.f32 %v1878_v46, %v1878_v46 }
 0x1e9   :  { %v1885_v33 = vadd.f32 %v1884_v41, %v1882_v25  ;;  %v1897_v43 = vadd.f32 %v1896_v52, %v1892_v57 }
 0x1ea   :  { %v1898_v55 = vsel %vm1883_vm10, %v1893_v32, 0.0 }
 0x1eb   :  { %1886 = vadd.xlane.f32.xlu1 %v1885_v33  ;;  %v1899_v58 = vadd.f32 %v1898_v55, %v1897_v43 }
 0x1ed   :  { %1900 = vadd.xlane.f32.xlu0 %v1899_v58 }
 0x203   :  { %1961 = vrot.lane.b32.xlu0 %v3933_v60, %s3916_s2 }
 0x207   :  { %1953 = vrot.lane.b32.xlu0 %v4337_v31, %s3920_s9 }
 0x20b   :  { %2123 = vrot.lane.b32.xlu0 %v3933_v60, %s3918_s7 }
 0x274   :  { %v1887_v61 = vpop.xlane.xlu1 %1886 }
 0x275   :  { %v1902_v15 = vmul.f32 0.001953125, %v1887_v61 }
 0x276   :  { %v1901_v8 = vpop.xlane.xlu0 %1900 }
 0x277   :  { %v1903_v37 = vmul.f32 0.001953125, %v1901_v8  ;;  %v1904_v0 = vmul.f32 %v1902_v15, %v1902_v15  ;;  %v1907_v11 = vsub.f32 %v4296_v62, %v1902_v15  ;;  %v1908_v45 = vsub.f32 %v4304_v4, %v1902_v15 }
 0x278   :  { %v1910_v30 = vsub.f32 %v1839_v27, %v1902_v15  ;;  %v1912_v12 = vsub.f32 %v1841_v22, %v1902_v15  ;;  %v1909_v20 = vsub.f32 %v4312_v14, %v1902_v15  ;;  %v1911_v36 = vsub.f32 %v4325_v29, %v1902_v15 }
 0x279   :  { %v1905_v51 = vsub.f32 %v1903_v37, %v1904_v0 }
 0x27a   :  { %v1962_v47 = vpop.permute.xlu0 %1961 }
 0x27b   :  { %v1906_v63 = vmax.f32 %v1905_v51, 0.0 }
 0x27d   :  { %v1913_v9 = vadd.f32 1e-05, %v1906_v63 }
 0x27e   :  { %v1954_v53 = vpop.permute.xlu0 %1953 }
 0x27f   :  { %3798 = vrsqrt.f32 %v1913_v9 }
 0x282   :  { %v2124_v13 = vpop.permute.xlu0 %2123 }
 0x28c   :  { %v3799_v2 = vpop.eup %3798 }
 0x28d   :  { %v1920_v18 = vmul.f32 %v3799_v2, %v1912_v12  ;;  %v1918_v54 = vmul.f32 %v3799_v2, %v1910_v30  ;;  %v1915_v19 = vmul.f32 %v3799_v2, %v1907_v11  ;;  %v1916_v56 = vmul.f32 %v3799_v2, %v1908_v45 }
 0x28e   :  { %v1917_v34 = vmul.f32 %v3799_v2, %v1909_v20  ;;  %v1919_v40 = vmul.f32 %v3799_v2, %v1911_v36 }
 0x28f   :  { %v1926_v21 = vmul.f32 %v1920_v18, %v4322_v44  ;;  %v1924_v24 = vmul.f32 %v1918_v54, %v4314_v17  ;;  %v1921_v3 = vmul.f32 %v1915_v19, %v4286_v49  ;;  %v1922_v27 = vmul.f32 %v1916_v56, %v4293_v48 }
 0x290   :  { %v1923_v38 = vmul.f32 %v1917_v34, %v4300_v35  ;;  %v1925_v28 = vmul.f32 %v1919_v40, %v4320_v42 }
 0x291   :  { %1936 = vst.msk [vmem:[#allocation2 + $0x30] sm:$0xff] %vm1883_vm10, %v1926_v21  ;;  %v4349_v62 = vpack.c.bf16 %v1924_v24, %v1924_v24  ;;  %v4351_v4 = vpack.c.bf16 %v1921_v3, %v1921_v3  ;;  %v4359_v14 = vpack.c.bf16 %v1922_v27, %v1922_v27 }
 0x292   :  { %v4366_v5 = vpack.c.bf16 %v1923_v38, %v1923_v38  ;;  %v4373_v10 = vpack.c.bf16 %v1925_v28, %v1925_v28 }
 0x293   :  { %1969 = vrot.lane.b32.xlu0 %v4349_v62, %s3916_s2  ;;  %1963 = vrot.lane.b32.xlu1 %v4351_v4, %s3916_s2 }
 0x297   :  { %2127 = vrot.lane.b32.xlu0 %v4359_v14, %s3918_s7  ;;  %1965 = vrot.lane.b32.xlu1 %v4359_v14, %s3916_s2 }
 0x298   :  { %v2459_v1 = vld [vmem:[#allocation2 + $0x30] sm:$0xff] }
 0x299   :  { %v4402_v29 = vpack.c.bf16 %v2459_v1, %v2459_v1 }
 0x29b   :  { %2131 = vrot.lane.b32.xlu0 %v4349_v62, %s3918_s7  ;;  %1967 = vrot.lane.b32.xlu1 %v4366_v5, %s3916_s2 }
 0x29f   :  { %2286 = vrot.lane.b32.xlu0 %v3933_v60, %s3919_s8  ;;  %1971 = vrot.lane.b32.xlu1 %v4373_v10, %s3916_s2 }
 0x2a3   :  { %2290 = vrot.lane.b32.xlu0 %v4359_v14, %s3919_s8  ;;  %2125 = vrot.lane.b32.xlu1 %v4351_v4, %s3918_s7 }
 0x2a7   :  { %2292 = vrot.lane.b32.xlu0 %v4366_v5, %s3919_s8  ;;  %2129 = vrot.lane.b32.xlu1 %v4366_v5, %s3918_s7 }
 0x2ab   :  { %2296 = vrot.lane.b32.xlu0 %v4373_v10, %s3919_s8  ;;  %2284 = vrot.lane.b32.xlu1 %v4337_v31, %s3923_s12 }
 0x2af   :  { %2478 = vrot.lane.b32.xlu0 %v4351_v4, %s3921_s10  ;;  %2133 = vrot.lane.b32.xlu1 %v4373_v10, %s3918_s7 }
 0x2b3   :  { %2482 = vrot.lane.b32.xlu0 %v4366_v5, %s3921_s10  ;;  %2288 = vrot.lane.b32.xlu1 %v4351_v4, %s3919_s8 }
 0x2b7   :  { %2467 = vrot.lane.b32.xlu0 %v4337_v31, %s3927_s16  ;;  %2294 = vrot.lane.b32.xlu1 %v4349_v62, %s3919_s8 }
 0x2bb   :  { %2488 = vrot.lane.b32.xlu0 %v4402_v29, %s3921_s10  ;;  %2476 = vrot.lane.b32.xlu1 %v3933_v60, %s3921_s10 }
 0x2bf   :  { %2967 = vrot.lane.b32.xlu0 %v4337_v31, %s3934_s21  ;;  %2480 = vrot.lane.b32.xlu1 %v4359_v14, %s3921_s10 }
 0x2c3   :  { %2800 = vrot.lane.b32.xlu0 %v4351_v4, %s3924_s13  ;;  %2484 = vrot.lane.b32.xlu1 %v4349_v62, %s3921_s10 }
 0x2c7   :  { %2804 = vrot.lane.b32.xlu0 %v4366_v5, %s3924_s13  ;;  %2486 = vrot.lane.b32.xlu1 %v4373_v10, %s3921_s10 }
 0x2cb   :  { %2808 = vrot.lane.b32.xlu0 %v4373_v10, %s3924_s13  ;;  %2646 = vrot.lane.b32.xlu1 %v4337_v31, %s3931_s20 }
 0x2cf   :  { %2810 = vrot.lane.b32.xlu0 %v4402_v29, %s3924_s13  ;;  %2798 = vrot.lane.b32.xlu1 %v4337_v31, %s3935_s22 }
 0x2d3   :  { %2971 = vrot.lane.b32.xlu0 %v4359_v14, %s3926_s15  ;;  %3136 = vrot.lane.b32.xlu1 %v4337_v31, %s3936_s23 }
 0x2d7   :  { %2977 = vrot.lane.b32.xlu0 %v4373_v10, %s3926_s15  ;;  %2802 = vrot.lane.b32.xlu1 %v4359_v14, %s3924_s13 }
 0x2db   :  { %3138 = vrot.lane.b32.xlu0 %v4351_v4, %s3928_s17  ;;  %2806 = vrot.lane.b32.xlu1 %v4349_v62, %s3924_s13 }
 0x2df   :  { %3142 = vrot.lane.b32.xlu0 %v4366_v5, %s3928_s17  ;;  %2969 = vrot.lane.b32.xlu1 %v4351_v4, %s3926_s15 }
 0x2e3   :  { %3146 = vrot.lane.b32.xlu0 %v4373_v10, %s3928_s17  ;;  %2973 = vrot.lane.b32.xlu1 %v4366_v5, %s3926_s15 }
 0x2e7   :  { %3148 = vrot.lane.b32.xlu0 %v4402_v29, %s3928_s17  ;;  %2975 = vrot.lane.b32.xlu1 %v4349_v62, %s3926_s15 }
 0x2eb   :  { %3309 = vrot.lane.b32.xlu0 %v4359_v14, %s3930_s19  ;;  %2979 = vrot.lane.b32.xlu1 %v4402_v29, %s3926_s15 }
 0x2ef   :  { %3305 = vrot.lane.b32.xlu0 %v4337_v31, %s3937_s24  ;;  %3140 = vrot.lane.b32.xlu1 %v4359_v14, %s3928_s17 }
 0x2f3   :  { %3315 = vrot.lane.b32.xlu0 %v4373_v10, %s3930_s19  ;;  %3144 = vrot.lane.b32.xlu1 %v4349_v62, %s3928_s17 }
 0x2f7   :  { %3307 = vrot.lane.b32.xlu1 %v4351_v4, %s3930_s19 }
 0x2fb   :  { %3311 = vrot.lane.b32.xlu1 %v4366_v5, %s3930_s19 }
 0x2ff   :  { %3313 = vrot.lane.b32.xlu1 %v4349_v62, %s3930_s19 }
 0x303   :  { %3317 = vrot.lane.b32.xlu1 %v4402_v29, %s3930_s19 }
 0x305   :  { %v1970_v7 = vpop.permute.xlu0 %1969  ;;  %v1964_v23 = vpop.permute.xlu1 %1963 }
 0x306   :  { %v1973_v22 = vsel %vm114_vm0, %v1962_v47, %v1964_v23 }
 0x307   :  { %v1983_v52 = vsel %vm1981_vm12, %v1973_v22, 0 }
 0x309   :  { %v2128_v39 = vpop.permute.xlu0 %2127  ;;  %v1966_v50 = vpop.permute.xlu1 %1965 }
 0x30a   :  { %v1974_v46 = vsel %vm114_vm0, %v1964_v23, %v1966_v50 }
 0x30b   :  { %3704 = vmatprep.subr.msk.bf16.mxu1 %vm1981_vm12, %v1974_v46 }
 0x30c   :  { %2015 = vmatpush1.bf16.msra.mxu1 %v1983_v52 }
 0x30d   :  { %v2132_v57 = vpop.permute.xlu0 %2131  ;;  %v1968_v16 = vpop.permute.xlu1 %1967 }
 0x30e   :  { %v1975_v25 = vsel %vm114_vm0, %v1966_v50, %v1968_v16  ;;  %v1976_v41 = vsel %vm114_vm0, %v1968_v16, %v1970_v7 }
 0x30f   :  { %v1989_v32 = vsel %vm1981_vm12, %v1975_v25, 0  ;;  %3705 = vmatmul.mubr.msk.bf16.vlgmr.msra.gmra.mxu1 %vm1883_vm10, %v1954_v53  ;;  %3706 = vmatprep.subr.msk.bf16.mxu0 %vm1981_vm12, %v1976_v41  ;;  %v2652_v41 = vsel %vm1981_vm12, %v4351_v4, 0 }
 0x310   :  { %2056 = vmatpush1.bf16.msra.mxu0 %v1989_v32  ;;  %2114 = vmatprep.mubr.bf16.mxu1 %v3915_v6 }
 0x311   :  { %v2287_v33 = vpop.permute.xlu0 %2286  ;;  %v1972_v43 = vpop.permute.xlu1 %1971 }
 0x312   :  { %v1977_v55 = vsel %vm114_vm0, %v1970_v7, %v1972_v43  ;;  %3708 = vmatprep.subr.msk.bf16.mxu1 %vm1981_vm12, %v1972_v43 }
 0x313   :  { %v1995_v58 = vsel %vm1981_vm12, %v1977_v55, 0  ;;  %3707 = vmatmul.mubr.msk.bf16.vlgmr.msra.gmra.mxu0 %vm1883_vm10, %v1954_v53 }
 0x314   :  { %2097 = vmatpush1.bf16.msra.mxu1 %v1995_v58  ;;  %2193 = vmatprep.mubr.bf16.mxu0 %v3915_v6 }
 0x315   :  { %v2291_v59 = vpop.permute.xlu0 %2290  ;;  %v2126_v60 = vpop.permute.xlu1 %2125 }
 0x316   :  { %v2135_v31 = vsel %vm278_vm3, %v2124_v13, %v2126_v60  ;;  %v2136_v61 = vsel %vm278_vm3, %v2126_v60, %v2128_v39 }
 0x317   :  { %v2144_v15 = vsel %vm1981_vm12, %v2135_v31, 0  ;;  %3709 = vmatmul.mubr.msk.bf16.vlgmr.msra.gmra.mxu1 %vm1883_vm10, %v1954_v53  ;;  %3710 = vmatprep.subr.msk.bf16.mxu0 %vm1981_vm12, %v2136_v61 }
 0x318   :  { %2176 = vmatpush1.bf16.msra.mxu0 %v2144_v15  ;;  %2234 = vmatprep.mubr.bf16.mxu1 %v3915_v6 }
 0x319   :  { %v2293_v8 = vpop.permute.xlu0 %2292  ;;  %v2130_v37 = vpop.permute.xlu1 %2129 }
 0x31a   :  { %v2137_v0 = vsel %vm278_vm3, %v2128_v39, %v2130_v37  ;;  %v2138_v51 = vsel %vm278_vm3, %v2130_v37, %v2132_v57  ;;  %v2300_v21 = vsel %vm475_vm4, %v2291_v59, %v2293_v8 }
 0x31b   :  { %v2150_v63 = vsel %vm1981_vm12, %v2137_v0, 0  ;;  %3711 = vmatmul.mubr.msk.bf16.vlgmr.msra.gmra.mxu0 %vm1883_vm10, %v4333_v26  ;;  %3712 = vmatprep.subr.msk.bf16.mxu1 %vm1981_vm12, %v2138_v51  ;;  %v2313_v36 = vsel %vm1981_vm12, %v2300_v21, 0 }
 0x31c   :  { %2217 = vmatpush1.bf16.msra.mxu1 %v2150_v63  ;;  %2275 = vmatprep.mubr.bf16.mxu0 %v3915_v6 }
 0x31d   :  { %v2297_v9 = vpop.permute.xlu0 %2296  ;;  %v2285_v11 = vpop.permute.xlu1 %2284 }
 0x31f   :  { %3713 = vmatmul.mubr.msk.bf16.vlgmr.msra.gmra.mxu1 %vm1883_vm10, %v4333_v26 }
 0x320   :  { %2356 = vmatprep.mubr.bf16.mxu1 %v3915_v6 }
 0x321   :  { %v2479_v45 = vpop.permute.xlu0 %2478  ;;  %v2134_v30 = vpop.permute.xlu1 %2133 }
 0x322   :  { %v2139_v12 = vsel %vm278_vm3, %v2132_v57, %v2134_v30  ;;  %3714 = vmatprep.subr.msk.bf16.mxu0 %vm1981_vm12, %v2134_v30 }
 0x323   :  { %v2156_v2 = vsel %vm1981_vm12, %v2139_v12, 0 }
 0x324   :  { %2258 = vmatpush1.bf16.msra.mxu0 %v2156_v2 }
 0x325   :  { %v2483_v18 = vpop.permute.xlu0 %2482  ;;  %v2289_v54 = vpop.permute.xlu1 %2288 }
 0x326   :  { %v2298_v19 = vsel %vm475_vm4, %v2287_v33, %v2289_v54  ;;  %v2299_v56 = vsel %vm475_vm4, %v2289_v54, %v2291_v59  ;;  %v2658_v33 = vsel %vm1981_vm12, %v4366_v5, 0 }
 0x327   :  { %v2307_v20 = vsel %vm1981_vm12, %v2298_v19, 0  ;;  %3715 = vmatmul.mubr.msk.bf16.vlgmr.msra.gmra.mxu0 %vm1883_vm10, %v4333_v26  ;;  %3716 = vmatprep.subr.msk.bf16.mxu1 %vm1981_vm12, %v2299_v56 }
 0x328   :  { %2339 = vmatpush1.bf16.msra.mxu1 %v2307_v20  ;;  %2397 = vmatprep.mubr.bf16.mxu0 %v3915_v6 }
 0x329   :  { %v2468_v24 = vpop.permute.xlu0 %2467  ;;  %3720 = vmatprep.subr.msk.bf16.mxu1 %vm1981_vm12, %v2297_v9  ;;  %v2295_v3 = vpop.permute.xlu1 %2294 }
 0x32a   :  { %v2301_v27 = vsel %vm475_vm4, %v2293_v8, %v2295_v3  ;;  %v2302_v34 = vsel %vm475_vm4, %v2295_v3, %v2297_v9 }
 0x32b   :  { %v2319_v38 = vsel %vm1981_vm12, %v2302_v34, 0  ;;  %3717 = vmatmul.mubr.msk.bf16.vlgmr.msra.gmra.mxu1 %vm1883_vm10, %v2285_v11  ;;  %3718 = vmatprep.subr.msk.bf16.mxu0 %vm1981_vm12, %v2301_v27 }
 0x32c   :  { %2380 = vmatpush1.bf16.msra.mxu0 %v2313_v36  ;;  %2421 = vmatpush1.bf16.msra.mxu1 %v2319_v38 }
 0x32d   :  { %v2489_v26 = vpop.permute.xlu0 %2488  ;;  %v2477_v40 = vpop.permute.xlu1 %2476  ;;  %2438 = vmatprep.mubr.bf16.mxu1 %v3915_v6 }
 0x32e   :  { %v2490_v28 = vsel %vm688_vm5, %v2477_v40, %v2479_v45 }
 0x32f   :  { %3719 = vmatmul.mubr.msk.bf16.vlgmr.msra.gmra.mxu0 %vm1883_vm10, %v2285_v11  ;;  %v2500_v13 = vsel %vm1981_vm12, %v2490_v28, 0 }
 0x330   :  { %2549 = vmatprep.mubr.bf16.mxu0 %v3915_v6 }
 0x331   :  { %v4520_v1 = vpop.permute.xlu0 %2967  ;;  %v2481_v47 = vpop.permute.xlu1 %2480 }
 0x332   :  { %v2491_v53 = vsel %vm688_vm5, %v2479_v45, %v2481_v47  ;;  %v2492_v7 = vsel %vm688_vm5, %v2481_v47, %v2483_v18 }
 0x333   :  { %3721 = vmatmul.mubr.msk.bf16.vlgmr.msra.gmra.mxu1 %vm1883_vm10, %v2285_v11  ;;  %3722 = vmatprep.subr.msk.bf16.mxu0 %vm1981_vm12, %v2491_v53  ;;  %v2506_v50 = vsel %vm1981_vm12, %v2492_v7, 0 }
 0x334   :  { %2532 = vmatpush1.bf16.msra.mxu0 %v2500_v13  ;;  %2590 = vmatprep.mubr.bf16.mxu1 %v3915_v6 }
 0x335   :  { %v2801_v23 = vpop.permute.xlu0 %2800  ;;  %v2485_v22 = vpop.permute.xlu1 %2484 }
 0x336   :  { %v2493_v39 = vsel %vm688_vm5, %v2483_v18, %v2485_v22 }
 0x337   :  { %3723 = vmatmul.mubr.msk.bf16.vlgmr.msra.gmra.mxu0 %vm1883_vm10, %v2468_v24  ;;  %3724 = vmatprep.subr.msk.bf16.mxu1 %vm1981_vm12, %v2493_v39 }
 0x338   :  { %2573 = vmatpush1.bf16.msra.mxu1 %v2506_v50  ;;  %2631 = vmatprep.mubr.bf16.mxu0 %v3915_v6 }
 0x339   :  { %v2805_v46 = vpop.permute.xlu0 %2804  ;;  %3728 = vmatprep.subr.msk.bf16.mxu1 %vm1981_vm12, %v4359_v14  ;;  %v2487_v52 = vpop.permute.xlu1 %2486 }
 0x33a   :  { %v2494_v57 = vsel %vm688_vm5, %v2485_v22, %v2487_v52  ;;  %v2495_v16 = vsel %vm688_vm5, %v2487_v52, %v2489_v26 }
 0x33b   :  { %v2512_v25 = vsel %vm1981_vm12, %v2494_v57, 0  ;;  %3725 = vmatmul.mubr.msk.bf16.vlgmr.msra.gmra.mxu1 %vm1883_vm10, %v2468_v24  ;;  %3726 = vmatprep.subr.msk.bf16.mxu0 %vm1981_vm12, %v2495_v16 }
 0x33c   :  { %2614 = vmatpush1.bf16.msra.mxu0 %v2512_v25  ;;  %2684 = vmatpush1.bf16.msra.mxu1 %v2652_v41 }
 0x33d   :  { %v2809_v32 = vpop.permute.xlu0 %2808  ;;  %3730 = vmatprep.subr.msk.bf16.mxu0 %vm1981_vm12, %v4349_v62  ;;  %3732 = vmatprep.subr.msk.bf16.mxu1 %vm1981_vm12, %v4402_v29  ;;  %v2647_v14 = vpop.permute.xlu1 %2646  ;;  %v2664_v62 = vsel %vm1981_vm12, %v4373_v10, 0 }
 0x33e   :  { %2701 = vmatprep.mubr.bf16.mxu1 %v3915_v6 }
 0x33f   :  { %3727 = vmatmul.mubr.msk.bf16.vlgmr.msra.gmra.mxu0 %vm1883_vm10, %v2468_v24 }
 0x340   :  { %2725 = vmatpush1.bf16.msra.mxu0 %v2658_v33  ;;  %2742 = vmatprep.mubr.bf16.mxu0 %v3915_v6 }
 0x341   :  { %v2811_v4 = vpop.permute.xlu0 %2810  ;;  %v2799_v43 = vpop.permute.xlu1 %2798 }
 0x342   :  { %v2816_v10 = vsel %vm1077_vm6, %v2809_v32, %v2811_v4 }
 0x343   :  { %3729 = vmatmul.mubr.msk.bf16.vlgmr.msra.gmra.mxu1 %vm1883_vm10, %v2647_v14  ;;  %v2833_v0 = vsel %vm1981_vm12, %v2816_v10, 0 }
 0x344   :  { %2766 = vmatpush1.bf16.msra.mxu1 %v2664_v62  ;;  %2783 = vmatprep.mubr.bf16.mxu1 %v3915_v6 }
 0x345   :  { %v2972_v29 = vpop.permute.xlu0 %2971  ;;  %v4555_v55 = vpop.permute.xlu1 %3136 }
 0x347   :  { %3731 = vmatmul.mubr.msk.bf16.vlgmr.msra.gmra.mxu0 %vm1883_vm10, %v2647_v14 }
 0x348   :  { %2870 = vmatprep.mubr.bf16.mxu0 %v3915_v6 }
 0x349   :  { %v2978_v5 = vpop.permute.xlu0 %2977  ;;  %v2803_v58 = vpop.permute.xlu1 %2802 }
 0x34a   :  { %v2812_v59 = vsel %vm1077_vm6, %v2801_v23, %v2803_v58  ;;  %v2813_v60 = vsel %vm1077_vm6, %v2803_v58, %v2805_v46 }
 0x34b   :  { %v2821_v31 = vsel %vm1981_vm12, %v2812_v59, 0  ;;  %3733 = vmatmul.mubr.msk.bf16.vlgmr.msra.gmra.mxu1 %vm1883_vm10, %v2647_v14  ;;  %3734 = vmatprep.subr.msk.bf16.mxu0 %vm1981_vm12, %v2813_v60 }
 0x34c   :  { %2853 = vmatpush1.bf16.msra.mxu0 %v2821_v31  ;;  %2911 = vmatprep.mubr.bf16.mxu1 %v3915_v6 }
 0x34d   :  { %v3139_v61 = vpop.permute.xlu0 %3138  ;;  %3738 = vmatprep.subr.msk.bf16.mxu0 %vm1981_vm12, %v2811_v4  ;;  %v2807_v15 = vpop.permute.xlu1 %2806 }
 0x34e   :  { %v2814_v8 = vsel %vm1077_vm6, %v2805_v46, %v2807_v15  ;;  %v2815_v37 = vsel %vm1077_vm6, %v2807_v15, %v2809_v32 }
 0x34f   :  { %v2827_v51 = vsel %vm1981_vm12, %v2814_v8, 0  ;;  %3735 = vmatmul.mubr.msk.bf16.vlgmr.msra.gmra.mxu0 %vm1883_vm10, %v2799_v43  ;;  %3736 = vmatprep.subr.msk.bf16.mxu1 %vm1981_vm12, %v2815_v37 }
 0x350   :  { %2894 = vmatpush1.bf16.msra.mxu1 %v2827_v51  ;;  %2935 = vmatpush1.bf16.msra.mxu0 %v2833_v0 }
 0x351   :  { %v2970_v63 = vpop.permute.xlu1 %2969  ;;  %2952 = vmatprep.mubr.bf16.mxu0 %v3915_v6  ;;  %v3143_v9 = vpop.permute.xlu0 %3142 }
 0x352   :  { %v2981_v11 = vsel %vm1280_vm7, %v2970_v63, %v2972_v29 }
 0x353   :  { %3737 = vmatmul.mubr.msk.bf16.vlgmr.msra.gmra.mxu1 %vm1883_vm10, %v2799_v43  ;;  %v2990_v12 = vsel %vm1981_vm12, %v2981_v11, 0 }
 0x354   :  { %3039 = vmatprep.mubr.bf16.mxu1 %v3915_v6 }
 0x355   :  { %v2974_v45 = vpop.permute.xlu1 %2973  ;;  %v3147_v2 = vpop.permute.xlu0 %3146 }
 0x356   :  { %v2982_v30 = vsel %vm1280_vm7, %v2972_v29, %v2974_v45 }
 0x357   :  { %3739 = vmatmul.mubr.msk.bf16.vlgmr.msra.gmra.mxu0 %vm1883_vm10, %v2799_v43  ;;  %3740 = vmatprep.subr.msk.bf16.mxu1 %vm1981_vm12, %v2982_v30 }
 0x358   :  { %3022 = vmatpush1.bf16.msra.mxu1 %v2990_v12  ;;  %3080 = vmatprep.mubr.bf16.mxu0 %v3915_v6 }
 0x359   :  { %v2976_v18 = vpop.permute.xlu1 %2975  ;;  %v3149_v24 = vpop.permute.xlu0 %3148 }
 0x35a   :  { %v2983_v54 = vsel %vm1280_vm7, %v2974_v45, %v2976_v18  ;;  %v2984_v19 = vsel %vm1280_vm7, %v2976_v18, %v2978_v5  ;;  %v3154_v26 = vsel %vm1483_vm8, %v3147_v2, %v3149_v24 }
 0x35b   :  { %v2996_v56 = vsel %vm1981_vm12, %v2983_v54, 0  ;;  %3741 = vmatmul.mubr.msk.bf16.vlgmr.msra.gmra.mxu1 %vm1883_vm10, %v4520_v1  ;;  %3742 = vmatprep.subr.msk.bf16.mxu0 %vm1981_vm12, %v2984_v19  ;;  %v3171_v13 = vsel %vm1981_vm12, %v3154_v26, 0 }
 0x35c   :  { %3063 = vmatpush1.bf16.msra.mxu0 %v2996_v56  ;;  %3121 = vmatprep.mubr.bf16.mxu1 %v3915_v6 }
 0x35d   :  { %v2980_v20 = vpop.permute.xlu1 %2979  ;;  %v3310_v40 = vpop.permute.xlu0 %3309 }
 0x35e   :  { %v2985_v21 = vsel %vm1280_vm7, %v2978_v5, %v2980_v20  ;;  %3744 = vmatprep.subr.msk.bf16.mxu1 %vm1981_vm12, %v2980_v20 }
 0x35f   :  { %v3002_v3 = vsel %vm1981_vm12, %v2985_v21, 0  ;;  %3743 = vmatmul.mubr.msk.bf16.vlgmr.msra.gmra.mxu0 %vm1883_vm10, %v4520_v1 }
 0x360   :  { %3104 = vmatpush1.bf16.msra.mxu1 %v3002_v3  ;;  %3208 = vmatprep.mubr.bf16.mxu0 %v3915_v6 }
 0x361   :  { %v3141_v27 = vpop.permute.xlu1 %3140  ;;  %v3306_v23 = vpop.permute.xlu0 %3305 }
 0x362   :  { %v3150_v34 = vsel %vm1483_vm8, %v3139_v61, %v3141_v27  ;;  %v3151_v36 = vsel %vm1483_vm8, %v3141_v27, %v3143_v9 }
 0x363   :  { %v3159_v38 = vsel %vm1981_vm12, %v3150_v34, 0  ;;  %3745 = vmatmul.mubr.msk.bf16.vlgmr.msra.gmra.mxu1 %vm1883_vm10, %v4520_v1  ;;  %3746 = vmatprep.subr.msk.bf16.mxu0 %vm1981_vm12, %v3151_v36 }
 0x364   :  { %3191 = vmatpush1.bf16.msra.mxu0 %v3159_v38  ;;  %3249 = vmatprep.mubr.bf16.mxu1 %v3915_v6 }
 0x365   :  { %3750 = vmatprep.subr.msk.bf16.mxu0 %vm1981_vm12, %v3149_v24  ;;  %v3145_v28 = vpop.permute.xlu1 %3144  ;;  %v3316_v52 = vpop.permute.xlu0 %3315 }
 0x366   :  { %v3152_v47 = vsel %vm1483_vm8, %v3143_v9, %v3145_v28  ;;  %v3153_v53 = vsel %vm1483_vm8, %v3145_v28, %v3147_v2 }
 0x367   :  { %v3165_v7 = vsel %vm1981_vm12, %v3152_v47, 0  ;;  %3747 = vmatmul.mubr.msk.bf16.vlgmr.msra.gmra.mxu0 %vm1883_vm10, %v4555_v55  ;;  %3748 = vmatprep.subr.msk.bf16.mxu1 %vm1981_vm12, %v3153_v53 }
 0x368   :  { %3232 = vmatpush1.bf16.msra.mxu1 %v3165_v7  ;;  %3273 = vmatpush1.bf16.msra.mxu0 %v3171_v13 }
 0x369   :  { %v3308_v1 = vpop.permute.xlu1 %3307  ;;  %3290 = vmatprep.mubr.bf16.mxu0 %v3915_v6 }
 0x36a   :  { %v3319_v22 = vsel %vm1686_vm9, %v3308_v1, %v3310_v40 }
 0x36b   :  { %3749 = vmatmul.mubr.msk.bf16.vlgmr.msra.gmra.mxu1 %vm1883_vm10, %v4555_v55  ;;  %v3328_v46 = vsel %vm1981_vm12, %v3319_v22, 0 }
 0x36c   :  { %3377 = vmatprep.mubr.bf16.mxu1 %v3915_v6 }
 0x36d   :  { %v3312_v39 = vpop.permute.xlu1 %3311 }
 0x36e   :  { %v3320_v50 = vsel %vm1686_vm9, %v3310_v40, %v3312_v39 }
 0x36f   :  { %3751 = vmatmul.mubr.msk.bf16.vlgmr.msra.gmra.mxu0 %vm1883_vm10, %v4555_v55  ;;  %3752 = vmatprep.subr.msk.bf16.mxu1 %vm1981_vm12, %v3320_v50 }
 0x370   :  { %3360 = vmatpush1.bf16.msra.mxu1 %v3328_v46  ;;  %3418 = vmatprep.mubr.bf16.mxu0 %v3915_v6 }
 0x371   :  { %v3314_v57 = vpop.permute.xlu1 %3313 }
 0x372   :  { %v3321_v16 = vsel %vm1686_vm9, %v3312_v39, %v3314_v57  ;;  %v3322_v25 = vsel %vm1686_vm9, %v3314_v57, %v3316_v52 }
 0x373   :  { %v3334_v41 = vsel %vm1981_vm12, %v3321_v16, 0  ;;  %3753 = vmatmul.mubr.msk.bf16.vlgmr.msra.gmra.mxu1 %vm1883_vm10, %v3306_v23  ;;  %3754 = vmatprep.subr.msk.bf16.mxu0 %vm1981_vm12, %v3322_v25 }
 0x374   :  { %3401 = vmatpush1.bf16.msra.mxu0 %v3334_v41  ;;  %3459 = vmatprep.mubr.bf16.mxu1 %v3915_v6 }
 0x375   :  { %v3318_v32 = vpop.permute.xlu1 %3317 }
 0x376   :  { %v3323_v14 = vsel %vm1686_vm9, %v3316_v52, %v3318_v32  ;;  %3756 = vmatprep.subr.msk.bf16.mxu1 %vm1981_vm12, %v3318_v32 }
 0x377   :  { %v3340_v33 = vsel %vm1981_vm12, %v3323_v14, 0  ;;  %3755 = vmatmul.mubr.msk.bf16.vlgmr.msra.gmra.mxu0 %vm1883_vm10, %v3306_v23 }
 0x378   :  { %3442 = vmatpush1.bf16.msra.mxu1 %v3340_v33 }
 0x37b   :  { %3757 = vmatmul.mubr.msk.bf16.vlgmr.msra.gmra.mxu1 %vm1883_vm10, %v3306_v23 }
 0x3cf   :  { %v2034_v4 = vpop.f32.mrf.mxu1 }
 0x3d1   :  { %v2036_v43 = vpop.f32.mrf.mxu1 }
 0x3d3   :  { %v2038_v62 = vpop.f32.mrf.mxu1  ;;  %v2075_v29 = vpop.f32.mrf.mxu0 }
 0x3d5   :  { %v2039_v55 = vpop.f32.mrf.mxu1  ;;  %v2077_v5 = vpop.f32.mrf.mxu0 }
 0x3d7   :  { %v2079_v58 = vpop.f32.mrf.mxu0  ;;  %v2116_v6 = vpop.f32.mrf.mxu1 }
 0x3d9   :  { %v2080_v59 = vpop.f32.mrf.mxu0  ;;  %v2118_v60 = vpop.f32.mrf.mxu1 }
 0x3db   :  { %v2120_v31 = vpop.f32.mrf.mxu1  ;;  %v2195_v10 = vpop.f32.mrf.mxu0 }
 0x3dc   :  { %v4633_v61 = vadd.f32 %v2195_v10, %v2034_v4 }
 0x3dd   :  { %v2121_v15 = vpop.f32.mrf.mxu1  ;;  %v2197_v8 = vpop.f32.mrf.mxu0 }
 0x3de   :  { %v4635_v37 = vadd.f32 %v2197_v8, %v2036_v43 }
 0x3df   :  { %v2236_v0 = vpop.f32.mrf.mxu1  ;;  %v2199_v51 = vpop.f32.mrf.mxu0 }
 0x3e0   :  { %v4637_v63 = vadd.f32 %v2236_v0, %v2075_v29 }
 0x3e1   :  { %v2238_v9 = vpop.f32.mrf.mxu1  ;;  %v2200_v11 = vpop.f32.mrf.mxu0 }
 0x3e2   :  { %v4639_v45 = vadd.f32 %v2238_v9, %v2077_v5 }
 0x3e3   :  { %v2240_v30 = vpop.f32.mrf.mxu1 }
 0x3e5   :  { %v2241_v12 = vpop.f32.mrf.mxu1 }
 0x3e7   :  { %v2277_v2 = vpop.f32.mrf.mxu0 }
 0x3e8   :  { %v4641_v18 = vadd.f32 %v2277_v2, %v2116_v6 }
 0x3e9   :  { %v2279_v54 = vpop.f32.mrf.mxu0 }
 0x3ea   :  { %v4643_v19 = vadd.f32 %v2279_v54, %v2118_v60 }
 0x3eb   :  { %v2281_v56 = vpop.f32.mrf.mxu0  ;;  %v2358_v20 = vpop.f32.mrf.mxu1 }
 0x3ed   :  { %v2282_v21 = vpop.f32.mrf.mxu0  ;;  %v2360_v24 = vpop.f32.mrf.mxu1 }
 0x3ef   :  { %v2362_v3 = vpop.f32.mrf.mxu1  ;;  %v4645_v27 = vpop.f32.mrf.mxu0 }
 0x3f1   :  { %v2363_v34 = vpop.f32.mrf.mxu1  ;;  %v4647_v36 = vpop.f32.mrf.mxu0 }
 0x3f3   :  { %v2403_v38 = vpop.f32.mrf.mxu0  ;;  %v4649_v26 = vpop.f32.mrf.mxu1 }
 0x3f5   :  { %v2404_v40 = vpop.f32.mrf.mxu0  ;;  %v4651_v28 = vpop.f32.mrf.mxu1 }
 0x3f7   :  { %v2444_v47 = vpop.f32.mrf.mxu1  ;;  %v2551_v53 = vpop.f32.mrf.mxu0 }
 0x3f9   :  { %v2445_v13 = vpop.f32.mrf.mxu1  ;;  %v2553_v7 = vpop.f32.mrf.mxu0 }
 0x3fb   :  { %v2555_v1 = vpop.f32.mrf.mxu0  ;;  %v2592_v23 = vpop.f32.mrf.mxu1 }
 0x3fd   :  { %v2556_v22 = vpop.f32.mrf.mxu0  ;;  %v2594_v39 = vpop.f32.mrf.mxu1 }
 0x3ff   :  { %v2596_v50 = vpop.f32.mrf.mxu1  ;;  %v4653_v46 = vpop.f32.mrf.mxu0 }
 0x400   :  { %v2447_v50 = vadd.f32 %v2358_v20, %v4633_v61 }
 0x401   :  { %v2597_v52 = vpop.f32.mrf.mxu1  ;;  %v4655_v57 = vpop.f32.mrf.mxu0 }
 0x403   :  { %v2637_v16 = vpop.f32.mrf.mxu0  ;;  %v2703_v25 = vpop.f32.mrf.mxu1 }
 0x405   :  { %v2638_v41 = vpop.f32.mrf.mxu0  ;;  %v2705_v32 = vpop.f32.mrf.mxu1 }
 0x406   :  { %v2448_v41 = vadd.f32 %v2360_v24, %v4635_v37 }
 0x407   :  { %v2707_v14 = vpop.f32.mrf.mxu1  ;;  %v2744_v33 = vpop.f32.mrf.mxu0 }
 0x408   :  { %v2640_v14 = vadd.f32 %v2551_v53, %v2447_v50 }
 0x409   :  { %v2708_v4 = vpop.f32.mrf.mxu1  ;;  %v2746_v43 = vpop.f32.mrf.mxu0 }
 0x40b   :  { %v2748_v62 = vpop.f32.mrf.mxu0  ;;  %v4657_v29 = vpop.f32.mrf.mxu1 }
 0x40d   :  { %v2749_v55 = vpop.f32.mrf.mxu0  ;;  %v4659_v5 = vpop.f32.mrf.mxu1 }
 0x40e   :  { %v2449_v55 = vadd.f32 %v4645_v27, %v4637_v63  ;;  %v2452_v63 = vadd.f32 %v4651_v28, %v4643_v19 }
 0x40f   :  { %v2789_v58 = vpop.f32.mrf.mxu1  ;;  %v2872_v6 = vpop.f32.mrf.mxu0 }
 0x410   :  { %v2641_v58 = vadd.f32 %v2553_v7, %v2448_v41 }
 0x411   :  { %v2790_v59 = vpop.f32.mrf.mxu1  ;;  %v2874_v60 = vpop.f32.mrf.mxu0 }
 0x412   :  { %v2792_v59 = vadd.f32 %v2703_v25, %v2640_v14 }
 0x413   :  { %v2876_v31 = vpop.f32.mrf.mxu0  ;;  %v2913_v10 = vpop.f32.mrf.mxu1 }
 0x414   :  { %v2961_v61 = vadd.f32 %v2872_v6, %v2792_v59 }
 0x415   :  { %v2877_v15 = vpop.f32.mrf.mxu0  ;;  %v2915_v8 = vpop.f32.mrf.mxu1 }
 0x417   :  { %v2917_v0 = vpop.f32.mrf.mxu1  ;;  %v4661_v51 = vpop.f32.mrf.mxu0 }
 0x418   :  { %v2450_v0 = vadd.f32 %v4647_v36, %v4639_v45 }
 0x419   :  { %v2918_v9 = vpop.f32.mrf.mxu1  ;;  %v2956_v11 = vpop.f32.mrf.mxu0 }
 0x41a   :  { %v2642_v9 = vadd.f32 %v2592_v23, %v2449_v55 }
 0x41b   :  { %v2958_v30 = vpop.f32.mrf.mxu0  ;;  %v3041_v12 = vpop.f32.mrf.mxu1 }
 0x41c   :  { %v2793_v30 = vadd.f32 %v2705_v32, %v2641_v58  ;;  %v2794_v37 = vadd.f32 %v2744_v33, %v2642_v9  ;;  %v3130_v53 = vadd.f32 %v3041_v12, %v2961_v61  ;;  %v2645_v32 = vadd.f32 %v4655_v57, %v2452_v63 }
 0x41d   :  { %v2959_v2 = vpop.f32.mrf.mxu0  ;;  %v3043_v54 = vpop.f32.mrf.mxu1 }
 0x41e   :  { %v2962_v24 = vadd.f32 %v2874_v60, %v2793_v30  ;;  %v2797_v19 = vadd.f32 %v4659_v5, %v2645_v32 }
 0x41f   :  { %v3045_v56 = vpop.f32.mrf.mxu1  ;;  %v3082_v21 = vpop.f32.mrf.mxu0 }
 0x420   :  { %v2643_v56 = vadd.f32 %v2594_v39, %v2450_v0  ;;  %v3131_v45 = vadd.f32 %v3043_v54, %v2962_v24 }
 0x421   :  { %v3046_v3 = vpop.f32.mrf.mxu1  ;;  %v3084_v34 = vpop.f32.mrf.mxu0 }
 0x422   :  { %v2451_v3 = vadd.f32 %v4649_v26, %v4641_v18  ;;  %v2795_v25 = vadd.f32 %v2746_v43, %v2643_v56 }
 0x423   :  { %v3086_v38 = vpop.f32.mrf.mxu0  ;;  %v3123_v40 = vpop.f32.mrf.mxu1 }
 0x424   :  { %v2963_v38 = vadd.f32 %v2913_v10, %v2794_v37  ;;  %v2644_v23 = vadd.f32 %v4653_v46, %v2451_v3  ;;  %v2964_v6 = vadd.f32 %v2915_v8, %v2795_v25  ;;  %v2966_v8 = vadd.f32 %v2956_v11, %v2797_v19 }
 0x425   :  { %v3087_v47 = vpop.f32.mrf.mxu0  ;;  %v3125_v13 = vpop.f32.mrf.mxu1 }
 0x426   :  { %v3132_v60 = vadd.f32 %v3082_v21, %v2963_v38  ;;  %v2796_v18 = vadd.f32 %v4657_v29, %v2644_v23  ;;  %v3133_v43 = vadd.f32 %v3084_v34, %v2964_v6 }
 0x427   :  { %v3127_v1 = vpop.f32.mrf.mxu1  ;;  %v3210_v22 = vpop.f32.mrf.mxu0 }
 0x428   :  { %v3299_v36 = vadd.f32 %v3210_v22, %v3130_v53  ;;  %v2965_v57 = vadd.f32 %v4661_v51, %v2796_v18 }
 0x429   :  { %v3128_v52 = vpop.f32.mrf.mxu1  ;;  %v3212_v16 = vpop.f32.mrf.mxu0 }
 0x42a   :  { %v3300_v12 = vadd.f32 %v3212_v16, %v3131_v45  ;;  %v3134_v5 = vadd.f32 %v3123_v40, %v2965_v57  ;;  %v3135_v52 = vadd.f32 %v3125_v13, %v2966_v8 }
 0x42b   :  { %v3214_v4 = vpop.f32.mrf.mxu0  ;;  %v3251_v62 = vpop.f32.mrf.mxu1 }
 0x42c   :  { %v3301_v10 = vadd.f32 %v3251_v62, %v3132_v60 }
 0x42d   :  { %v3215_v31 = vpop.f32.mrf.mxu0  ;;  %v3253_v15 = vpop.f32.mrf.mxu1 }
 0x42e   :  { %v3302_v22 = vadd.f32 %v3253_v15, %v3133_v43 }
 0x42f   :  { %v3255_v20 = vpop.f32.mrf.mxu1  ;;  %v3292_v2 = vpop.f32.mrf.mxu0 }
 0x430   :  { %v3303_v55 = vadd.f32 %v3292_v2, %v3134_v5 }
 0x431   :  { %v3256_v27 = vpop.f32.mrf.mxu1  ;;  %v3294_v7 = vpop.f32.mrf.mxu0 }
 0x432   :  { %v3304_v51 = vadd.f32 %v3294_v7, %v3135_v52 }
 0x433   :  { %v3296_v39 = vpop.f32.mrf.mxu0  ;;  %v3379_v33 = vpop.f32.mrf.mxu1 }
 0x434   :  { %v4675_v47 = vadd.f32 %v3379_v33, %v3299_v36 }
 0x435   :  { %v3297_v26 = vpop.f32.mrf.mxu0  ;;  %v3381_v28 = vpop.f32.mrf.mxu1 }
 0x436   :  { %v3474_v46 = vmul.f32 %v4675_v47, %v4286_v49  ;;  %v4681_v54 = vadd.f32 %v3381_v28, %v3300_v12 }
 0x437   :  { %v3383_v21 = vpop.f32.mrf.mxu1  ;;  %v3420_v1 = vpop.f32.mrf.mxu0 }
 0x438   :  { %v3475_v29 = vmul.f32 %v4681_v54, %v4293_v48  ;;  %v3470_v50 = vadd.f32 %v3420_v1, %v3301_v10  ;;  %v3488_v16 = vmul.f32 %v3474_v46, %v3474_v46 }
 0x439   :  { %v3384_v34 = vpop.f32.mrf.mxu1  ;;  %v3422_v41 = vpop.f32.mrf.mxu0 }
 0x43a   :  { %v3480_v14 = vadd.f32 %v3475_v29, %v3474_v46  ;;  %v3489_v4 = vmul.f32 %v3475_v29, %v3475_v29  ;;  %v3476_v49 = vmul.f32 %v3470_v50, %v4300_v35  ;;  %v3471_v62 = vadd.f32 %v3422_v41, %v3302_v22 }
 0x43b   :  { %v3424_v11 = vpop.f32.mrf.mxu0  ;;  %v3461_v58 = vpop.f32.mrf.mxu1 }
 0x43c   :  { %v3494_v59 = vadd.f32 %v3489_v4, %v3488_v16  ;;  %v3481_v31 = vadd.f32 %v3480_v14, %v3476_v49  ;;  %v3490_v15 = vmul.f32 %v3476_v49, %v3476_v49  ;;  %v3477_v48 = vmul.f32 %v3471_v62, %v4314_v17 }
 0x43d   :  { %v3472_v0 = vadd.f32 %v3461_v58, %v3303_v55  ;;  %v3425_v40 = vpop.f32.mrf.mxu0  ;;  %v3463_v13 = vpop.f32.mrf.mxu1 }
 0x43e   :  { %v3495_v9 = vadd.f32 %v3494_v59, %v3490_v15  ;;  %v3482_v30 = vadd.f32 %v3481_v31, %v3477_v48  ;;  %v3491_v61 = vmul.f32 %v3477_v48, %v3477_v48  ;;  %v3473_v20 = vadd.f32 %v3463_v13, %v3304_v51 }
 0x43f   :  { %v3478_v56 = vmul.f32 %v3472_v0, %v4320_v42  ;;  %v3465_v35 = vpop.f32.mrf.mxu1 }
 0x440   :  { %v3496_v37 = vadd.f32 %v3495_v9, %v3491_v61  ;;  %v3479_v2 = vmul.f32 %v3473_v20, %v4322_v44 }
 0x441   :  { %v3483_v24 = vadd.f32 %v3482_v30, %v3478_v56  ;;  %v3492_v53 = vmul.f32 %v3478_v56, %v3478_v56  ;;  %v3466_v3 = vpop.f32.mrf.mxu1 }
 0x442   :  { %v3484_v63 = vsel %vm1883_vm10, %v3479_v2, 0.0  ;;  %v3493_v27 = vmul.f32 %v3479_v2, %v3479_v2 }
 0x443   :  { %v3485_v17 = vadd.f32 %v3484_v63, %v3483_v24  ;;  %v3497_v7 = vadd.f32 %v3496_v37, %v3492_v53 }
 0x444   :  { %v3498_v25 = vsel %vm1883_vm10, %v3493_v27, 0.0 }
 0x445   :  { %3486 = vadd.xlane.f32.xlu0 %v3485_v17  ;;  %v3499_v38 = vadd.f32 %v3498_v25, %v3497_v7 }
 0x447   :  { %3500 = vadd.xlane.f32.xlu1 %v3499_v38 }
 0x4ce   :  { %v3487_v45 = vpop.xlane.xlu0 %3486 }
 0x4cf   :  { %v3502_v36 = vmul.f32 0.001953125, %v3487_v45 }
 0x4d0   :  { %v3501_v42 = vpop.xlane.xlu1 %3500 }
 0x4d1   :  { %v3503_v23 = vmul.f32 0.001953125, %v3501_v42  ;;  %v3504_v32 = vmul.f32 %v3502_v36, %v3502_v36  ;;  %v3507_v6 = vsub.f32 %v4675_v47, %v3502_v36  ;;  %v3508_v60 = vsub.f32 %v4681_v54, %v3502_v36 }
 0x4d2   :  { %v3509_v12 = vsub.f32 %v3470_v50, %v3502_v36  ;;  %v3510_v18 = vsub.f32 %v3471_v62, %v3502_v36  ;;  %v3511_v26 = vsub.f32 %v3472_v0, %v3502_v36  ;;  %v3512_v28 = vsub.f32 %v3473_v20, %v3502_v36 }
 0x4d3   :  { %v3505_v39 = vsub.f32 %v3503_v23, %v3504_v32 }
 0x4d5   :  { %v3506_v44 = vmax.f32 %v3505_v39, 0.0 }
 0x4d7   :  { %v3513_v33 = vadd.f32 1e-05, %v3506_v44 }
 0x4d9   :  { %3800 = vrsqrt.f32 %v3513_v33 }
 0x4e6   :  { %v3801_v19 = vpop.eup %3800 }
 0x4e7   :  { %v3516_v43 = vmul.f32 %v3801_v19, %v3508_v60  ;;  %v3515_v10 = vmul.f32 %v3801_v19, %v3507_v6  ;;  %v3518_v46 = vmul.f32 %v3801_v19, %v3510_v18  ;;  %v3517_v57 = vmul.f32 %v3801_v19, %v3509_v12 }
 0x4e8   :  { %v3520_v8 = vmul.f32 %v3801_v19, %v3512_v28  ;;  %v3519_v21 = vmul.f32 %v3801_v19, %v3511_v26 }
 0x4e9   :  { %3541 = vrot.lane.b32.xlu1 %v3516_v43, %s3924_s13  ;;  %3539 = vrot.lane.b32.xlu0 %v3515_v10, %s3924_s13 }
 0x4ea   :  { %3526 = vst.msk [vmem:[#allocation2 + $0x30] sm:$0xff] %vm1883_vm10, %v3520_v8 }
 0x4ed   :  { %3545 = vrot.lane.b32.xlu1 %v3518_v46, %s3924_s13  ;;  %3543 = vrot.lane.b32.xlu0 %v3517_v57, %s3924_s13 }
 0x4f1   :  { %v3532_v47 = vld [vmem:[#allocation2 + $0x30] sm:$0xff]  ;;  %3547 = vrot.lane.b32.xlu0 %v3519_v21, %s3924_s13 }
 0x4f2   :  { %3549 = vrot.lane.b32.xlu1 %v3532_v47, %s3924_s13 }
 0x55b   :  { %v3542_v54 = vpop.permute.xlu1 %3541  ;;  %v3540_v1 = vpop.permute.xlu0 %3539 }
 0x55c   :  { %v3552_v22 = vsel %vm1077_vm6, %v3540_v1, %v3542_v54 }
 0x55d   :  { %v3563_v29 = vmax.f32 %v3515_v10, %v3552_v22 }
 0x55f   :  { %v3546_v50 = vpop.permute.xlu1 %3545  ;;  %3581 = vrot.lane.b32.xlu0 %v3563_v29, %s3928_s17  ;;  %v3544_v5 = vpop.permute.xlu0 %3543 }
 0x560   :  { %v3553_v52 = vsel %vm1077_vm6, %v3542_v54, %v3544_v5  ;;  %v3554_v16 = vsel %vm1077_vm6, %v3544_v5, %v3546_v50 }
 0x561   :  { %v3564_v34 = vmax.f32 %v3516_v43, %v3553_v52  ;;  %v3565_v41 = vmax.f32 %v3517_v57, %v3554_v16 }
 0x563   :  { %3585 = vrot.lane.b32.xlu0 %v3565_v41, %s3928_s17  ;;  %3583 = vrot.lane.b32.xlu1 %v3564_v34, %s3928_s17  ;;  %v3548_v14 = vpop.permute.xlu0 %3547 }
 0x564   :  { %v3550_v4 = vpop.permute.xlu1 %3549  ;;  %v3555_v49 = vsel %vm1077_vm6, %v3546_v50, %v3548_v14 }
 0x565   :  { %v3556_v62 = vsel %vm1077_vm6, %v3548_v14, %v3550_v4  ;;  %v3566_v55 = vmax.f32 %v3518_v46, %v3555_v49  ;;  %v3574_v11 = vmax.f32 %v3532_v47, %v3550_v4  ;;  %v3568_v35 = vmax.f32 %v3520_v8, %v3550_v4 }
 0x566   :  { %v3567_v51 = vmax.f32 %v3519_v21, %v3556_v62 }
 0x567   :  { %3587 = vrot.lane.b32.xlu1 %v3566_v55, %s3928_s17 }
 0x568   :  { %3589 = vrot.lane.b32.xlu0 %v3567_v51, %s3928_s17 }
 0x56b   :  { %3591 = vrot.lane.b32.xlu1 %v3574_v11, %s3928_s17 }
 0x5d1   :  { %v3582_v58 = vpop.permute.xlu0 %3581 }
 0x5d5   :  { %v3584_v59 = vpop.permute.xlu1 %3583  ;;  %v3586_v31 = vpop.permute.xlu0 %3585 }
 0x5d6   :  { %v3594_v15 = vsel %vm1483_vm8, %v3582_v58, %v3584_v59  ;;  %v3595_v48 = vsel %vm1483_vm8, %v3584_v59, %v3586_v31 }
 0x5d7   :  { %v3605_v0 = vmax.f32 %v3563_v29, %v3594_v15  ;;  %v3606_v40 = vmax.f32 %v3564_v34, %v3595_v48 }
 0x5d9   :  { %3611 = vst [vmem:[#allocation11] sm:$0xff] %v3605_v0  ;;  %3612 = vst [vmem:[#allocation11 + $0x8] sm:$0xff] %v3606_v40  ;;  %v3588_v13 = vpop.permute.xlu1 %3587 }
 0x5da   :  { %v3596_v9 = vsel %vm1483_vm8, %v3586_v31, %v3588_v13  ;;  %v3590_v30 = vpop.permute.xlu0 %3589 }
 0x5db   :  { %v3607_v61 = vmax.f32 %v3565_v41, %v3596_v9  ;;  %v3597_v20 = vsel %vm1483_vm8, %v3588_v13, %v3590_v30 }
 0x5dc   :  { %v3608_v56 = vmax.f32 %v3566_v55, %v3597_v20 }
 0x5dd   :  { %3613 = vst [vmem:[#allocation11 + $0x10] sm:$0xff] %v3607_v61  ;;  %v3592_v37 = vpop.permute.xlu1 %3591 }
 0x5de   :  { %3614 = vst [vmem:[#allocation11 + $0x18] sm:$0xff] %v3608_v56  ;;  %v3598_v2 = vsel %vm1483_vm8, %v3590_v30, %v3592_v37  ;;  %v3610_v24 = vmax.f32 %v3568_v35, %v3592_v37 }
 0x5df   :  { %v3609_v53 = vmax.f32 %v3567_v51, %v3598_v2 }
 0x5e0   :  { %3616 = vst.msk [vmem:[#allocation11 + $0x28] sm:$0xff] %vm1883_vm10, %v3610_v24 }
 0x5e1   :  { %3615 = vst [vmem:[#allocation11 + $0x20] sm:$0xff] %v3609_v53 }
 0x5e2   :  { %3893 = shalt.err (!%p3890_p10)
}
 0x5e3   :  { %3626 = dma.vmem_to_hbm [thread:$0]  %s3624_s26, 768, %s4725_s4, [#allocation5]  }
 0x5e4   :  { %3908 = dma.done.wait [#allocation5], 768  }
 0x5e5   :  { %3909 = vsyncadd [#allocation5], 4294966528 }
 0x5e6   :  { %3630 = vsyncpa [#allocation4], 1 }
 0x5e7   :  { %3631 = vsyncpa [#allocation7], 1 }
 0x5e8   :  { %3632 = vsyncpa [#allocation10], 1 }
 0x5e9   :  { %3633 = vsyncpa [#allocation5], 1 }

</bundles_post_ra>
